<compile_context>
chip_gen: v7x
topology: tpu7x:2x2x1
jax: 0.10.0
libtpu: 0.0.40
codegen_flags: <defaults>
</compile_context>

<pallas_src>
import numpy as np

import jax
import jax.numpy as jnp
from jax.experimental import pallas as pl
from jax.experimental.pallas import tpu as pltpu

NUM_HEADS = 15
PATCH = 16          # encoder output stride (os=16)


# ---------------------------------------------------------------------------
# Bilinear interpolation matrices (align_corners=True), numpy -> jit constants.
# ---------------------------------------------------------------------------
def _interp_matrix_np(out_size, in_size):
    """Row-stochastic (out_size, in_size) bilinear matrix, align_corners=True."""
    if in_size == 1:
        return np.ones((out_size, 1), np.float32)
    m = np.zeros((out_size, in_size), np.float32)
    if out_size == 1:
        m[0, 0] = 1.0
        return m
    src = np.arange(out_size, dtype=np.float64) * ((in_size - 1) / (out_size - 1))
    p0 = np.clip(np.floor(src).astype(np.int64), 0, in_size - 1)
    p1 = np.clip(p0 + 1, 0, in_size - 1)
    w1 = (src - p0).astype(np.float32)
    w0 = np.float32(1.0) - w1
    rows = np.arange(out_size)
    np.add.at(m, (rows, p0), w0)
    np.add.at(m, (rows, p1), w1)
    return m


def _pick_h_tile(H, W, Cout, cap_bytes=8 << 20):
    """Largest TH dividing H (multiple of 8, or == H) with a <=cap f32 output block."""
    cands = [th for th in range(H, 0, -1)
             if H % th == 0 and (th % 8 == 0 or th == H)]
    for th in cands:
        if Cout * th * W * 4 <= cap_bytes:
            return th
    return cands[-1]


_CP = lambda sem: pltpu.CompilerParams(dimension_semantics=sem,
                                       vmem_limit_bytes=40 * 1024 * 1024)


# ---------------------------------------------------------------------------
# Stage 1: encoder stand-in -- one channels-first MXU matmul per image.
# ---------------------------------------------------------------------------
def _encoder_matmul(patches_t, w2, bias, *, B, Cout, K, hw):
    def kernel(p_ref, w2_ref, b_ref, f_ref):
        f_ref[0] = (
            jnp.dot(w2_ref[...], p_ref[0], preferred_element_type=jnp.float32)
            + b_ref[...]
        ).astype(jnp.bfloat16)

    return pl.pallas_call(
        kernel,
        out_shape=jax.ShapeDtypeStruct((B, Cout, hw), jnp.bfloat16),
        grid=(B,),
        in_specs=[
            pl.BlockSpec((1, K, hw), lambda b: (b, 0, 0)),   # im2col patches (per image)
            pl.BlockSpec((Cout, K), lambda b: (0, 0)),       # conv weights, channels-first
            pl.BlockSpec((Cout, 1), lambda b: (0, 0)),       # bias
        ],
        out_specs=pl.BlockSpec((1, Cout, hw), lambda b: (b, 0, 0)),
        compiler_params=_CP(("parallel",)),
    )(patches_t, w2, bias)


# ---------------------------------------------------------------------------
# Stage 2: exact bilinear W-interpolation (per channel), channels-first output.
# ---------------------------------------------------------------------------
def _w_interp(feat, awT, *, B, Cout, h, w, W):
    def kernel(f_ref, a_ref, g_ref):
        a = a_ref[...]
        for c in range(Cout):                      # Cout = 15, static unroll
            g_ref[0, c] = jnp.dot(
                f_ref[0, c], a, preferred_element_type=jnp.float32
            ).astype(jnp.bfloat16)

    return pl.pallas_call(
        kernel,
        out_shape=jax.ShapeDtypeStruct((B, Cout, h, W), jnp.bfloat16),
        grid=(B,),
        in_specs=[
            pl.BlockSpec((1, Cout, h, w), lambda b: (b, 0, 0, 0)),   # encoder features
            pl.BlockSpec((w, W), lambda b: (0, 0)),                  # Aw^T
        ],
        out_specs=pl.BlockSpec((1, Cout, h, W), lambda b: (b, 0, 0, 0)),
        compiler_params=_CP(("parallel",)),
    )(feat, awT)


# ---------------------------------------------------------------------------
# Stage 3: exact bilinear H-interpolation, NCHW lane-dense output (the heavy one).
# ---------------------------------------------------------------------------
def _h_interp_to_nchw(g, ah, *, B, Cout, h, H, W, TH):
    n_tiles = H // TH

    def kernel(g_ref, a_ref, o_ref):
        a = a_ref[...]
        for c in range(Cout):                      # per-channel (TH,h)@(h,W), NCHW store
            o_ref[0, c] = jnp.dot(a, g_ref[0, c], preferred_element_type=jnp.float32)

    return pl.pallas_call(
        kernel,
        out_shape=jax.ShapeDtypeStruct((B, Cout, H, W), jnp.float32),
        grid=(B, n_tiles),
        in_specs=[
            pl.BlockSpec((1, Cout, h, W), lambda b, t: (b, 0, 0, 0)),  # G (fetched once per b)
            pl.BlockSpec((TH, h), lambda b, t: (t, 0)),                # Ah tile
        ],
        out_specs=pl.BlockSpec((1, Cout, TH, W), lambda b, t: (b, 0, t, 0)),
        compiler_params=_CP(("parallel", "parallel")),   # megacore splits B and H tiles
    )(g, ah)


# ---------------------------------------------------------------------------
# network.forward
# ---------------------------------------------------------------------------
@jax.jit
def network_forward(img, conv_w, conv_b):
    B, Cin, H, W = img.shape
    assert H % PATCH == 0 and W % PATCH == 0, "input H/W must be multiples of os=16"
    h, w = H // PATCH, W // PATCH
    hw = h * w
    Cout = conv_w.shape[0]
    K = Cin * PATCH * PATCH

    # im2col glue (plain XLA): rows ordered (ci, dy, dx); columns ordered (y, x).
    # Cast to bf16 before the transpose to halve its HBM traffic.
    p = img.astype(jnp.bfloat16).reshape(B, Cin, h, PATCH, w, PATCH)
    patches_t = p.transpose(0, 1, 3, 5, 2, 4).reshape(B, K, hw)

    w2 = conv_w.reshape(Cout, K).astype(jnp.bfloat16)
    bias = conv_b.reshape(Cout, 1).astype(jnp.float32)

    # Interp matrices depend only on static shapes -> compile-time constants.
    ah = jnp.asarray(_interp_matrix_np(H, h), jnp.bfloat16)       # (H, h)
    awT = jnp.asarray(_interp_matrix_np(W, w).T, jnp.bfloat16)    # (w, W)

    feat = _encoder_matmul(patches_t, w2, bias, B=B, Cout=Cout, K=K, hw=hw)
    feat = feat.reshape(B, Cout, h, w)          # row-major metadata reshape (free in XLA)
    g = _w_interp(feat, awT, B=B, Cout=Cout, h=h, w=w, W=W)

    TH = _pick_h_tile(H, W, Cout)
    return _h_interp_to_nchw(g, ah, B=B, Cout=Cout, h=h, H=H, W=W, TH=TH)


# ---------------------------------------------------------------------------
# Pure-numpy reference (same stand-in encoder + exact bilinear) for validation
# ---------------------------------------------------------------------------
def _reference_forward_np(img, conv_w, conv_b):
    B, Cin, H, W = img.shape
    h, wd = H // PATCH, W // PATCH
    Cout = conv_w.shape[0]
    p = img.reshape(B, Cin, h, PATCH, wd, PATCH).transpose(0, 2, 4, 1, 3, 5)
    p = p.reshape(B, h * wd, Cin * PATCH * PATCH)
    f = p @ conv_w.reshape(Cout, -1).T + conv_b            # (B, h*w, Cout)
    f = f.reshape(B, h, wd, Cout)
    ah = _interp_matrix_np(H, h)
    aw = _interp_matrix_np(W, wd)
    t = np.einsum('Yy,byxc->bYxc', ah, f)
    o = np.einsum('Xx,bYxc->bYXc', aw, t)
    return o.transpose(0, 3, 1, 2)                         # (B, Cout, H, W)


if __name__ == "__main__":
    key = jax.random.PRNGKey(0)
    k_img, k_w, k_b = jax.random.split(key, 3)

    B, Cin, H, W = 2, 3, 64, 64                            # small NCHW input, os=16 -> 4x4 features
    img = jax.random.normal(k_img, (B, Cin, H, W), dtype=jnp.float32)
    w = jax.random.normal(k_w, (NUM_HEADS, Cin, PATCH, PATCH), dtype=jnp.float32) * 0.02
    b = jax.random.normal(k_b, (NUM_HEADS,), dtype=jnp.float32) * 0.01

    out = network_forward(img, w, b)
    out = jax.block_until_ready(out)
    assert out.shape == (B, NUM_HEADS, H, W), out.shape

    ref = _reference_forward_np(np.asarray(img), np.asarray(w), np.asarray(b))
    err = float(np.max(np.abs(np.asarray(out) - ref)))
    assert err < 5e-2, f"max abs error vs reference = {err}"

    print("KERNEL_OK")
</pallas_src>

<mosaic_0001>
module attributes {stable_mosaic.version = 11 : i64} {
  func.func @kernel(%arg0: i32, %arg1: memref<1x768x16xbf16, #tpu.memory_space<vmem>>, %arg2: memref<15x768xbf16, #tpu.memory_space<vmem>>, %arg3: memref<15x1xf32, #tpu.memory_space<vmem>>, %arg4: memref<1x15x16xbf16, #tpu.memory_space<vmem>>) attributes {dimension_semantics = [#tpu.dimension_semantics<parallel>], iteration_bounds = array<i64: 2>, scalar_prefetch = 0 : i64, scratch_operands = 0 : i64, tpu.core_type = #tpu.core_type<tc>, window_params = [{transform_indices = @transform_0, window_bounds = array<i64: 1, 768, 16>}, {pipeline_mode = #tpu.pipeline_mode<synchronous>, transform_indices = @transform_1, window_bounds = array<i64: 15, 768>}, {pipeline_mode = #tpu.pipeline_mode<synchronous>, transform_indices = @transform_2, window_bounds = array<i64: 15, 1>}, {transform_indices = @transform_3, window_bounds = array<i64: 1, 15, 16>}]} {
    %c0 = arith.constant 0 : index
    %c0_0 = arith.constant 0 : index
    %0 = vector.load %arg2[%c0, %c0_0] : memref<15x768xbf16, #tpu.memory_space<vmem>>, vector<15x768xbf16>
    %c0_1 = arith.constant 0 : index
    %c0_2 = arith.constant 0 : index
    %c0_3 = arith.constant 0 : index
    %1 = vector.load %arg1[%c0_1, %c0_2, %c0_3] : memref<1x768x16xbf16, #tpu.memory_space<vmem>>, vector<1x768x16xbf16>
    %2 = vector.shape_cast %1 : vector<1x768x16xbf16> to vector<768x16xbf16>
    %cst = arith.constant dense<0.000000e+00> : vector<15x16xf32>
    %3 = tpu.matmul %0, %2, %cst {dimension_numbers = #tpu.dot_dimension_numbers<[1], [0], [0], [1], [0, 0, 1, 1], [], []>} : vector<15x768xbf16>, vector<768x16xbf16>, vector<15x16xf32> -> vector<15x16xf32>
    %c0_4 = arith.constant 0 : index
    %c0_5 = arith.constant 0 : index
    %4 = vector.load %arg3[%c0_4, %c0_5] : memref<15x1xf32, #tpu.memory_space<vmem>>, vector<15x1xf32>
    %5 = vector.broadcast %4 : vector<15x1xf32> to vector<15x16xf32>
    %6 = arith.addf %3, %5 : vector<15x16xf32>
    %7 = arith.truncf %6 : vector<15x16xf32> to vector<15x16xbf16>
    %c0_6 = arith.constant 0 : index
    %c0_7 = arith.constant 0 : index
    %c0_8 = arith.constant 0 : index
    %8 = vector.load %arg4[%c0_6, %c0_7, %c0_8] : memref<1x15x16xbf16, #tpu.memory_space<vmem>>, vector<1x15x16xbf16>
    %9 = vector.shape_cast %8 : vector<1x15x16xbf16> to vector<15x16xbf16>
    %10 = vector.shape_cast %7 : vector<15x16xbf16> to vector<1x15x16xbf16>
    tpu.vector_store %arg4[%c0_6, %c0_7, %c0_8], %10 {strides = array<i32>} : memref<1x15x16xbf16, #tpu.memory_space<vmem>>, vector<1x15x16xbf16>,
    return
  }
  func.func @transform_0(%arg0: i32) -> (i32, i32, i32) {
    %c0_i32 = arith.constant 0 : i32
    %c0_i32_0 = arith.constant 0 : i32
    %c0_i32_1 = arith.constant 0 : i32
    return %arg0, %c0_i32, %c0_i32_0 : i32, i32, i32
  }
  func.func @transform_1(%arg0: i32) -> (i32, i32) {
    %c0_i32 = arith.constant 0 : i32
    %c0_i32_0 = arith.constant 0 : i32
    %c0_i32_1 = arith.constant 0 : i32
    return %c0_i32, %c0_i32_0 : i32, i32
  }
  func.func @transform_2(%arg0: i32) -> (i32, i32) {
    %c0_i32 = arith.constant 0 : i32
    %c0_i32_0 = arith.constant 0 : i32
    %c0_i32_1 = arith.constant 0 : i32
    return %c0_i32, %c0_i32_0 : i32, i32
  }
  func.func @transform_3(%arg0: i32) -> (i32, i32, i32) {
    %c0_i32 = arith.constant 0 : i32
    %c0_i32_0 = arith.constant 0 : i32
    %c0_i32_1 = arith.constant 0 : i32
    return %arg0, %c0_i32, %c0_i32_0 : i32, i32, i32
  }
}

module attributes {stable_mosaic.version = 11 : i64} {
  func.func @kernel(%arg0: i32, %arg1: i32, %arg2: memref<1x15x4x64xbf16, #tpu.memory_space<vmem>>, %arg3: memref<64x4xbf16, #tpu.memory_space<vmem>>, %arg4: memref<1x15x64x64xf32, #tpu.memory_space<vmem>>) attributes {dimension_semantics = [#tpu.dimension_semantics<parallel>, #tpu.dimension_semantics<parallel>], iteration_bounds = array<i64: 2, 1>, scalar_prefetch = 0 : i64, scratch_operands = 0 : i64, tpu.core_type = #tpu.core_type<tc>, window_params = [{transform_indices = @transform_0, window_bounds = array<i64: 1, 15, 4, 64>}, {transform_indices = @transform_1, window_bounds = array<i64: 64, 4>}, {transform_indices = @transform_2, window_bounds = array<i64: 1, 15, 64, 64>}]} {
    %c0 = arith.constant 0 : index
    %c0_0 = arith.constant 0 : index
    %0 = vector.load %arg3[%c0, %c0_0] : memref<64x4xbf16, #tpu.memory_space<vmem>>, vector<64x4xbf16>
    %c0_1 = arith.constant 0 : index
    %c0_2 = arith.constant 0 : index
    %c0_3 = arith.constant 0 : index
    %c0_4 = arith.constant 0 : index
    %1 = vector.load %arg2[%c0_1, %c0_2, %c0_3, %c0_4] : memref<1x15x4x64xbf16, #tpu.memory_space<vmem>>, vector<1x1x4x64xbf16>
    %2 = vector.shape_cast %1 : vector<1x1x4x64xbf16> to vector<4x64xbf16>
    %cst = arith.constant dense<0.000000e+00> : vector<64x64xf32>
    %3 = tpu.matmul %0, %2, %cst {dimension_numbers = #tpu.dot_dimension_numbers<[1], [0], [0], [1], [0, 0, 1, 1], [], []>} : vector<64x4xbf16>, vector<4x64xbf16>, vector<64x64xf32> -> vector<64x64xf32>
    %c0_5 = arith.constant 0 : index
    %c0_6 = arith.constant 0 : index
    %c0_7 = arith.constant 0 : index
    %c0_8 = arith.constant 0 : index
    %4 = vector.load %arg4[%c0_5, %c0_6, %c0_7, %c0_8] : memref<1x15x64x64xf32, #tpu.memory_space<vmem>>, vector<1x1x64x64xf32>
    %5 = vector.shape_cast %4 : vector<1x1x64x64xf32> to vector<64x64xf32>
    %6 = vector.shape_cast %3 : vector<64x64xf32> to vector<1x1x64x64xf32>
    tpu.vector_store %arg4[%c0_5, %c0_6, %c0_7, %c0_8], %6 {strides = array<i32>} : memref<1x15x64x64xf32, #tpu.memory_space<vmem>>, vector<1x1x64x64xf32>,
    %c0_9 = arith.constant 0 : index
    %c1 = arith.constant 1 : index
    %c0_10 = arith.constant 0 : index
    %c0_11 = arith.constant 0 : index
    %7 = vector.load %arg2[%c0_9, %c1, %c0_10, %c0_11] : memref<1x15x4x64xbf16, #tpu.memory_space<vmem>>, vector<1x1x4x64xbf16>
    %8 = vector.shape_cast %7 : vector<1x1x4x64xbf16> to vector<4x64xbf16>
    %cst_12 = arith.constant dense<0.000000e+00> : vector<64x64xf32>
    %9 = tpu.matmul %0, %8, %cst_12 {dimension_numbers = #tpu.dot_dimension_numbers<[1], [0], [0], [1], [0, 0, 1, 1], [], []>} : vector<64x4xbf16>, vector<4x64xbf16>, vector<64x64xf32> -> vector<64x64xf32>
    %c0_13 = arith.constant 0 : index
    %c1_14 = arith.constant 1 : index
    %c0_15 = arith.constant 0 : index
    %c0_16 = arith.constant 0 : index
    %10 = vector.load %arg4[%c0_13, %c1_14, %c0_15, %c0_16] : memref<1x15x64x64xf32, #tpu.memory_space<vmem>>, vector<1x1x64x64xf32>
    %11 = vector.shape_cast %10 : vector<1x1x64x64xf32> to vector<64x64xf32>
    %12 = vector.shape_cast %9 : vector<64x64xf32> to vector<1x1x64x64xf32>
    tpu.vector_store %arg4[%c0_13, %c1_14, %c0_15, %c0_16], %12 {strides = array<i32>} : memref<1x15x64x64xf32, #tpu.memory_space<vmem>>, vector<1x1x64x64xf32>,
    %c0_17 = arith.constant 0 : index
    %c2 = arith.constant 2 : index
    %c0_18 = arith.constant 0 : index
    %c0_19 = arith.constant 0 : index
    %13 = vector.load %arg2[%c0_17, %c2, %c0_18, %c0_19] : memref<1x15x4x64xbf16, #tpu.memory_space<vmem>>, vector<1x1x4x64xbf16>
    %14 = vector.shape_cast %13 : vector<1x1x4x64xbf16> to vector<4x64xbf16>
    %cst_20 = arith.constant dense<0.000000e+00> : vector<64x64xf32>
    %15 = tpu.matmul %0, %14, %cst_20 {dimension_numbers = #tpu.dot_dimension_numbers<[1], [0], [0], [1], [0, 0, 1, 1], [], []>} : vector<64x4xbf16>, vector<4x64xbf16>, vector<64x64xf32> -> vector<64x64xf32>
    %c0_21 = arith.constant 0 : index
    %c2_22 = arith.constant 2 : index
    %c0_23 = arith.constant 0 : index
    %c0_24 = arith.constant 0 : index
    %16 = vector.load %arg4[%c0_21, %c2_22, %c0_23, %c0_24] : memref<1x15x64x64xf32, #tpu.memory_space<vmem>>, vector<1x1x64x64xf32>
    %17 = vector.shape_cast %16 : vector<1x1x64x64xf32> to vector<64x64xf32>
    %18 = vector.shape_cast %15 : vector<64x64xf32> to vector<1x1x64x64xf32>
    tpu.vector_store %arg4[%c0_21, %c2_22, %c0_23, %c0_24], %18 {strides = array<i32>} : memref<1x15x64x64xf32, #tpu.memory_space<vmem>>, vector<1x1x64x64xf32>,
    %c0_25 = arith.constant 0 : index
    %c3 = arith.constant 3 : index
    %c0_26 = arith.constant 0 : index
    %c0_27 = arith.constant 0 : index
    %19 = vector.load %arg2[%c0_25, %c3, %c0_26, %c0_27] : memref<1x15x4x64xbf16, #tpu.memory_space<vmem>>, vector<1x1x4x64xbf16>
    %20 = vector.shape_cast %19 : vector<1x1x4x64xbf16> to vector<4x64xbf16>
    %cst_28 = arith.constant dense<0.000000e+00> : vector<64x64xf32>
    %21 = tpu.matmul %0, %20, %cst_28 {dimension_numbers = #tpu.dot_dimension_numbers<[1], [0], [0], [1], [0, 0, 1, 1], [], []>} : vector<64x4xbf16>, vector<4x64xbf16>, vector<64x64xf32> -> vector<64x64xf32>
    %c0_29 = arith.constant 0 : index
    %c3_30 = arith.constant 3 : index
    %c0_31 = arith.constant 0 : index
    %c0_32 = arith.constant 0 : index
    %22 = vector.load %arg4[%c0_29, %c3_30, %c0_31, %c0_32] : memref<1x15x64x64xf32, #tpu.memory_space<vmem>>, vector<1x1x64x64xf32>
    %23 = vector.shape_cast %22 : vector<1x1x64x64xf32> to vector<64x64xf32>
    %24 = vector.shape_cast %21 : vector<64x64xf32> to vector<1x1x64x64xf32>
    tpu.vector_store %arg4[%c0_29, %c3_30, %c0_31, %c0_32], %24 {strides = array<i32>} : memref<1x15x64x64xf32, #tpu.memory_space<vmem>>, vector<1x1x64x64xf32>,
    %c0_33 = arith.constant 0 : index
    %c4 = arith.constant 4 : index
    %c0_34 = arith.constant 0 : index
    %c0_35 = arith.constant 0 : index
    %25 = vector.load %arg2[%c0_33, %c4, %c0_34, %c0_35] : memref<1x15x4x64xbf16, #tpu.memory_space<vmem>>, vector<1x1x4x64xbf16>
    %26 = vector.shape_cast %25 : vector<1x1x4x64xbf16> to vector<4x64xbf16>
    %cst_36 = arith.constant dense<0.000000e+00> : vector<64x64xf32>
    %27 = tpu.matmul %0, %26, %cst_36 {dimension_numbers = #tpu.dot_dimension_numbers<[1], [0], [0], [1], [0, 0, 1, 1], [], []>} : vector<64x4xbf16>, vector<4x64xbf16>, vector<64x64xf32> -> vector<64x64xf32>
    %c0_37 = arith.constant 0 : index
    %c4_38 = arith.constant 4 : index
    %c0_39 = arith.constant 0 : index
    %c0_40 = arith.constant 0 : index
    %28 = vector.load %arg4[%c0_37, %c4_38, %c0_39, %c0_40] : memref<1x15x64x64xf32, #tpu.memory_space<vmem>>, vector<1x1x64x64xf32>
    %29 = vector.shape_cast %28 : vector<1x1x64x64xf32> to vector<64x64xf32>
    %30 = vector.shape_cast %27 : vector<64x64xf32> to vector<1x1x64x64xf32>
    tpu.vector_store %arg4[%c0_37, %c4_38, %c0_39, %c0_40], %30 {strides = array<i32>} : memref<1x15x64x64xf32, #tpu.memory_space<vmem>>, vector<1x1x64x64xf32>,
    %c0_41 = arith.constant 0 : index
    %c5 = arith.constant 5 : index
    %c0_42 = arith.constant 0 : index
    %c0_43 = arith.constant 0 : index
    %31 = vector.load %arg2[%c0_41, %c5, %c0_42, %c0_43] : memref<1x15x4x64xbf16, #tpu.memory_space<vmem>>, vector<1x1x4x64xbf16>
    %32 = vector.shape_cast %31 : vector<1x1x4x64xbf16> to vector<4x64xbf16>
    %cst_44 = arith.constant dense<0.000000e+00> : vector<64x64xf32>
    %33 = tpu.matmul %0, %32, %cst_44 {dimension_numbers = #tpu.dot_dimension_numbers<[1], [0], [0], [1], [0, 0, 1, 1], [], []>} : vector<64x4xbf16>, vector<4x64xbf16>, vector<64x64xf32> -> vector<64x64xf32>
    %c0_45 = arith.constant 0 : index
    %c5_46 = arith.constant 5 : index
    %c0_47 = arith.constant 0 : index
    %c0_48 = arith.constant 0 : index
    %34 = vector.load %arg4[%c0_45, %c5_46, %c0_47, %c0_48] : memref<1x15x64x64xf32, #tpu.memory_space<vmem>>, vector<1x1x64x64xf32>
    %35 = vector.shape_cast %34 : vector<1x1x64x64xf32> to vector<64x64xf32>
    %36 = vector.shape_cast %33 : vector<64x64xf32> to vector<1x1x64x64xf32>
    tpu.vector_store %arg4[%c0_45, %c5_46, %c0_47, %c0_48], %36 {strides = array<i32>} : memref<1x15x64x64xf32, #tpu.memory_space<vmem>>, vector<1x1x64x64xf32>,
    %c0_49 = arith.constant 0 : index
    %c6 = arith.constant 6 : index
    %c0_50 = arith.constant 0 : index
    %c0_51 = arith.constant 0 : index
    %37 = vector.load %arg2[%c0_49, %c6, %c0_50, %c0_51] : memref<1x15x4x64xbf16, #tpu.memory_space<vmem>>, vector<1x1x4x64xbf16>
    %38 = vector.shape_cast %37 : vector<1x1x4x64xbf16> to vector<4x64xbf16>
    %cst_52 = arith.constant dense<0.000000e+00> : vector<64x64xf32>
    %39 = tpu.matmul %0, %38, %cst_52 {dimension_numbers = #tpu.dot_dimension_numbers<[1], [0], [0], [1], [0, 0, 1, 1], [], []>} : vector<64x4xbf16>, vector<4x64xbf16>, vector<64x64xf32> -> vector<64x64xf32>
    %c0_53 = arith.constant 0 : index
    %c6_54 = arith.constant 6 : index
    %c0_55 = arith.constant 0 : index
    %c0_56 = arith.constant 0 : index
    %40 = vector.load %arg4[%c0_53, %c6_54, %c0_55, %c0_56] : memref<1x15x64x64xf32, #tpu.memory_space<vmem>>, vector<1x1x64x64xf32>
    %41 = vector.shape_cast %40 : vector<1x1x64x64xf32> to vector<64x64xf32>
    %42 = vector.shape_cast %39 : vector<64x64xf32> to vector<1x1x64x64xf32>
    tpu.vector_store %arg4[%c0_53, %c6_54, %c0_55, %c0_56], %42 {strides = array<i32>} : memref<1x15x64x64xf32, #tpu.memory_space<vmem>>, vector<1x1x64x64xf32>,
    %c0_57 = arith.constant 0 : index
    %c7 = arith.constant 7 : index
    %c0_58 = arith.constant 0 : index
    %c0_59 = arith.constant 0 : index
    %43 = vector.load %arg2[%c0_57, %c7, %c0_58, %c0_59] : memref<1x15x4x64xbf16, #tpu.memory_space<vmem>>, vector<1x1x4x64xbf16>
    %44 = vector.shape_cast %43 : vector<1x1x4x64xbf16> to vector<4x64xbf16>
    %cst_60 = arith.constant dense<0.000000e+00> : vector<64x64xf32>
    %45 = tpu.matmul %0, %44, %cst_60 {dimension_numbers = #tpu.dot_dimension_numbers<[1], [0], [0], [1], [0, 0, 1, 1], [], []>} : vector<64x4xbf16>, vector<4x64xbf16>, vector<64x64xf32> -> vector<64x64xf32>
    %c0_61 = arith.constant 0 : index
    %c7_62 = arith.constant 7 : index
    %c0_63 = arith.constant 0 : index
    %c0_64 = arith.constant 0 : index
    %46 = vector.load %arg4[%c0_61, %c7_62, %c0_63, %c0_64] : memref<1x15x64x64xf32, #tpu.memory_space<vmem>>, vector<1x1x64x64xf32>
    %47 = vector.shape_cast %46 : vector<1x1x64x64xf32> to vector<64x64xf32>
    %48 = vector.shape_cast %45 : vector<64x64xf32> to vector<1x1x64x64xf32>
    tpu.vector_store %arg4[%c0_61, %c7_62, %c0_63, %c0_64], %48 {strides = array<i32>} : memref<1x15x64x64xf32, #tpu.memory_space<vmem>>, vector<1x1x64x64xf32>,
    %c0_65 = arith.constant 0 : index
    %c8 = arith.constant 8 : index
    %c0_66 = arith.constant 0 : index
    %c0_67 = arith.constant 0 : index
    %49 = vector.load %arg2[%c0_65, %c8, %c0_66, %c0_67] : memref<1x15x4x64xbf16, #tpu.memory_space<vmem>>, vector<1x1x4x64xbf16>
    %50 = vector.shape_cast %49 : vector<1x1x4x64xbf16> to vector<4x64xbf16>
    %cst_68 = arith.constant dense<0.000000e+00> : vector<64x64xf32>
    %51 = tpu.matmul %0, %50, %cst_68 {dimension_numbers = #tpu.dot_dimension_numbers<[1], [0], [0], [1], [0, 0, 1, 1], [], []>} : vector<64x4xbf16>, vector<4x64xbf16>, vector<64x64xf32> -> vector<64x64xf32>
    %c0_69 = arith.constant 0 : index
    %c8_70 = arith.constant 8 : index
    %c0_71 = arith.constant 0 : index
    %c0_72 = arith.constant 0 : index
    %52 = vector.load %arg4[%c0_69, %c8_70, %c0_71, %c0_72] : memref<1x15x64x64xf32, #tpu.memory_space<vmem>>, vector<1x1x64x64xf32>
    %53 = vector.shape_cast %52 : vector<1x1x64x64xf32> to vector<64x64xf32>
    %54 = vector.shape_cast %51 : vector<64x64xf32> to vector<1x1x64x64xf32>
    tpu.vector_store %arg4[%c0_69, %c8_70, %c0_71, %c0_72], %54 {strides = array<i32>} : memref<1x15x64x64xf32, #tpu.memory_space<vmem>>, vector<1x1x64x64xf32>,
    %c0_73 = arith.constant 0 : index
    %c9 = arith.constant 9 : index
    %c0_74 = arith.constant 0 : index
    %c0_75 = arith.constant 0 : index
    %55 = vector.load %arg2[%c0_73, %c9, %c0_74, %c0_75] : memref<1x15x4x64xbf16, #tpu.memory_space<vmem>>, vector<1x1x4x64xbf16>
    %56 = vector.shape_cast %55 : vector<1x1x4x64xbf16> to vector<4x64xbf16>
    %cst_76 = arith.constant dense<0.000000e+00> : vector<64x64xf32>
    %57 = tpu.matmul %0, %56, %cst_76 {dimension_numbers = #tpu.dot_dimension_numbers<[1], [0], [0], [1], [0, 0, 1, 1], [], []>} : vector<64x4xbf16>, vector<4x64xbf16>, vector<64x64xf32> -> vector<64x64xf32>
    %c0_77 = arith.constant 0 : index
    %c9_78 = arith.constant 9 : index
    %c0_79 = arith.constant 0 : index
    %c0_80 = arith.constant 0 : index
    %58 = vector.load %arg4[%c0_77, %c9_78, %c0_79, %c0_80] : memref<1x15x64x64xf32, #tpu.memory_space<vmem>>, vector<1x1x64x64xf32>
    %59 = vector.shape_cast %58 : vector<1x1x64x64xf32> to vector<64x64xf32>
    %60 = vector.shape_cast %57 : vector<64x64xf32> to vector<1x1x64x64xf32>
    tpu.vector_store %arg4[%c0_77, %c9_78, %c0_79, %c0_80], %60 {strides = array<i32>} : memref<1x15x64x64xf32, #tpu.memory_space<vmem>>, vector<1x1x64x64xf32>,
    %c0_81 = arith.constant 0 : index
    %c10 = arith.constant 10 : index
    %c0_82 = arith.constant 0 : index
    %c0_83 = arith.constant 0 : index
    %61 = vector.load %arg2[%c0_81, %c10, %c0_82, %c0_83] : memref<1x15x4x64xbf16, #tpu.memory_space<vmem>>, vector<1x1x4x64xbf16>
    %62 = vector.shape_cast %61 : vector<1x1x4x64xbf16> to vector<4x64xbf16>
    %cst_84 = arith.constant dense<0.000000e+00> : vector<64x64xf32>
    %63 = tpu.matmul %0, %62, %cst_84 {dimension_numbers = #tpu.dot_dimension_numbers<[1], [0], [0], [1], [0, 0, 1, 1], [], []>} : vector<64x4xbf16>, vector<4x64xbf16>, vector<64x64xf32> -> vector<64x64xf32>
    %c0_85 = arith.constant 0 : index
    %c10_86 = arith.constant 10 : index
    %c0_87 = arith.constant 0 : index
    %c0_88 = arith.constant 0 : index
    %64 = vector.load %arg4[%c0_85, %c10_86, %c0_87, %c0_88] : memref<1x15x64x64xf32, #tpu.memory_space<vmem>>, vector<1x1x64x64xf32>
    %65 = vector.shape_cast %64 : vector<1x1x64x64xf32> to vector<64x64xf32>
    %66 = vector.shape_cast %63 : vector<64x64xf32> to vector<1x1x64x64xf32>
    tpu.vector_store %arg4[%c0_85, %c10_86, %c0_87, %c0_88], %66 {strides = array<i32>} : memref<1x15x64x64xf32, #tpu.memory_space<vmem>>, vector<1x1x64x64xf32>,
    %c0_89 = arith.constant 0 : index
    %c11 = arith.constant 11 : index
    %c0_90 = arith.constant 0 : index
    %c0_91 = arith.constant 0 : index
    %67 = vector.load %arg2[%c0_89, %c11, %c0_90, %c0_91] : memref<1x15x4x64xbf16, #tpu.memory_space<vmem>>, vector<1x1x4x64xbf16>
    %68 = vector.shape_cast %67 : vector<1x1x4x64xbf16> to vector<4x64xbf16>
    %cst_92 = arith.constant dense<0.000000e+00> : vector<64x64xf32>
    %69 = tpu.matmul %0, %68, %cst_92 {dimension_numbers = #tpu.dot_dimension_numbers<[1], [0], [0], [1], [0, 0, 1, 1], [], []>} : vector<64x4xbf16>, vector<4x64xbf16>, vector<64x64xf32> -> vector<64x64xf32>
    %c0_93 = arith.constant 0 : index
    %c11_94 = arith.constant 11 : index
    %c0_95 = arith.constant 0 : index
    %c0_96 = arith.constant 0 : index
    %70 = vector.load %arg4[%c0_93, %c11_94, %c0_95, %c0_96] : memref<1x15x64x64xf32, #tpu.memory_space<vmem>>, vector<1x1x64x64xf32>
    %71 = vector.shape_cast %70 : vector<1x1x64x64xf32> to vector<64x64xf32>
    %72 = vector.shape_cast %69 : vector<64x64xf32> to vector<1x1x64x64xf32>
    tpu.vector_store %arg4[%c0_93, %c11_94, %c0_95, %c0_96], %72 {strides = array<i32>} : memref<1x15x64x64xf32, #tpu.memory_space<vmem>>, vector<1x1x64x64xf32>,
    %c0_97 = arith.constant 0 : index
    %c12 = arith.constant 12 : index
    %c0_98 = arith.constant 0 : index
    %c0_99 = arith.constant 0 : index
    %73 = vector.load %arg2[%c0_97, %c12, %c0_98, %c0_99] : memref<1x15x4x64xbf16, #tpu.memory_space<vmem>>, vector<1x1x4x64xbf16>
    %74 = vector.shape_cast %73 : vector<1x1x4x64xbf16> to vector<4x64xbf16>
    %cst_100 = arith.constant dense<0.000000e+00> : vector<64x64xf32>
    %75 = tpu.matmul %0, %74, %cst_100 {dimension_numbers = #tpu.dot_dimension_numbers<[1], [0], [0], [1], [0, 0, 1, 1], [], []>} : vector<64x4xbf16>, vector<4x64xbf16>, vector<64x64xf32> -> vector<64x64xf32>
    %c0_101 = arith.constant 0 : index
    %c12_102 = arith.constant 12 : index
    %c0_103 = arith.constant 0 : index
    %c0_104 = arith.constant 0 : index
    %76 = vector.load %arg4[%c0_101, %c12_102, %c0_103, %c0_104] : memref<1x15x64x64xf32, #tpu.memory_space<vmem>>, vector<1x1x64x64xf32>
    %77 = vector.shape_cast %76 : vector<1x1x64x64xf32> to vector<64x64xf32>
    %78 = vector.shape_cast %75 : vector<64x64xf32> to vector<1x1x64x64xf32>
    tpu.vector_store %arg4[%c0_101, %c12_102, %c0_103, %c0_104], %78 {strides = array<i32>} : memref<1x15x64x64xf32, #tpu.memory_space<vmem>>, vector<1x1x64x64xf32>,
    %c0_105 = arith.constant 0 : index
    %c13 = arith.constant 13 : index
    %c0_106 = arith.constant 0 : index
    %c0_107 = arith.constant 0 : index
    %79 = vector.load %arg2[%c0_105, %c13, %c0_106, %c0_107] : memref<1x15x4x64xbf16, #tpu.memory_space<vmem>>, vector<1x1x4x64xbf16>
    %80 = vector.shape_cast %79 : vector<1x1x4x64xbf16> to vector<4x64xbf16>
    %cst_108 = arith.constant dense<0.000000e+00> : vector<64x64xf32>
    %81 = tpu.matmul %0, %80, %cst_108 {dimension_numbers = #tpu.dot_dimension_numbers<[1], [0], [0], [1], [0, 0, 1, 1], [], []>} : vector<64x4xbf16>, vector<4x64xbf16>, vector<64x64xf32> -> vector<64x64xf32>
    %c0_109 = arith.constant 0 : index
    %c13_110 = arith.constant 13 : index
    %c0_111 = arith.constant 0 : index
    %c0_112 = arith.constant 0 : index
    %82 = vector.load %arg4[%c0_109, %c13_110, %c0_111, %c0_112] : memref<1x15x64x64xf32, #tpu.memory_space<vmem>>, vector<1x1x64x64xf32>
    %83 = vector.shape_cast %82 : vector<1x1x64x64xf32> to vector<64x64xf32>
    %84 = vector.shape_cast %81 : vector<64x64xf32> to vector<1x1x64x64xf32>
    tpu.vector_store %arg4[%c0_109, %c13_110, %c0_111, %c0_112], %84 {strides = array<i32>} : memref<1x15x64x64xf32, #tpu.memory_space<vmem>>, vector<1x1x64x64xf32>,
    %c0_113 = arith.constant 0 : index
    %c14 = arith.constant 14 : index
    %c0_114 = arith.constant 0 : index
    %c0_115 = arith.constant 0 : index
    %85 = vector.load %arg2[%c0_113, %c14, %c0_114, %c0_115] : memref<1x15x4x64xbf16, #tpu.memory_space<vmem>>, vector<1x1x4x64xbf16>
    %86 = vector.shape_cast %85 : vector<1x1x4x64xbf16> to vector<4x64xbf16>
    %cst_116 = arith.constant dense<0.000000e+00> : vector<64x64xf32>
    %87 = tpu.matmul %0, %86, %cst_116 {dimension_numbers = #tpu.dot_dimension_numbers<[1], [0], [0], [1], [0, 0, 1, 1], [], []>} : vector<64x4xbf16>, vector<4x64xbf16>, vector<64x64xf32> -> vector<64x64xf32>
    %c0_117 = arith.constant 0 : index
    %c14_118 = arith.constant 14 : index
    %c0_119 = arith.constant 0 : index
    %c0_120 = arith.constant 0 : index
    %88 = vector.load %arg4[%c0_117, %c14_118, %c0_119, %c0_120] : memref<1x15x64x64xf32, #tpu.memory_space<vmem>>, vector<1x1x64x64xf32>
    %89 = vector.shape_cast %88 : vector<1x1x64x64xf32> to vector<64x64xf32>
    %90 = vector.shape_cast %87 : vector<64x64xf32> to vector<1x1x64x64xf32>
    tpu.vector_store %arg4[%c0_117, %c14_118, %c0_119, %c0_120], %90 {strides = array<i32>} : memref<1x15x64x64xf32, #tpu.memory_space<vmem>>, vector<1x1x64x64xf32>,
    return
  }
  func.func @transform_0(%arg0: i32, %arg1: i32) -> (i32, i32, i32, i32) {
    %c0_i32 = arith.constant 0 : i32
    %c0_i32_0 = arith.constant 0 : i32
    %c0_i32_1 = arith.constant 0 : i32
    %c0_i32_2 = arith.constant 0 : i32
    return %arg0, %c0_i32, %c0_i32_0, %c0_i32_1 : i32, i32, i32, i32
  }
  func.func @transform_1(%arg0: i32, %arg1: i32) -> (i32, i32) {
    %c0_i32 = arith.constant 0 : i32
    %c0_i32_0 = arith.constant 0 : i32
    return %arg1, %c0_i32 : i32, i32
  }
  func.func @transform_2(%arg0: i32, %arg1: i32) -> (i32, i32, i32, i32) {
    %c0_i32 = arith.constant 0 : i32
    %c0_i32_0 = arith.constant 0 : i32
    %c0_i32_1 = arith.constant 0 : i32
    return %arg0, %c0_i32, %arg1, %c0_i32_0 : i32, i32, i32, i32
  }
}

module attributes {stable_mosaic.version = 11 : i64} {
  func.func @kernel(%arg0: i32, %arg1: memref<1x15x4x4xbf16, #tpu.memory_space<vmem>>, %arg2: memref<4x64xbf16, #tpu.memory_space<vmem>>, %arg3: memref<1x15x4x64xbf16, #tpu.memory_space<vmem>>) attributes {dimension_semantics = [#tpu.dimension_semantics<parallel>], iteration_bounds = array<i64: 2>, scalar_prefetch = 0 : i64, scratch_operands = 0 : i64, tpu.core_type = #tpu.core_type<tc>, window_params = [{transform_indices = @transform_0, window_bounds = array<i64: 1, 15, 4, 4>}, {pipeline_mode = #tpu.pipeline_mode<synchronous>, transform_indices = @transform_1, window_bounds = array<i64: 4, 64>}, {transform_indices = @transform_2, window_bounds = array<i64: 1, 15, 4, 64>}]} {
    %c0 = arith.constant 0 : index
    %c0_0 = arith.constant 0 : index
    %0 = vector.load %arg2[%c0, %c0_0] : memref<4x64xbf16, #tpu.memory_space<vmem>>, vector<4x64xbf16>
    %c0_1 = arith.constant 0 : index
    %c0_2 = arith.constant 0 : index
    %c0_3 = arith.constant 0 : index
    %c0_4 = arith.constant 0 : index
    %1 = vector.load %arg1[%c0_1, %c0_2, %c0_3, %c0_4] : memref<1x15x4x4xbf16, #tpu.memory_space<vmem>>, vector<1x1x4x4xbf16>
    %2 = vector.shape_cast %1 : vector<1x1x4x4xbf16> to vector<4x4xbf16>
    %cst = arith.constant dense<0.000000e+00> : vector<4x64xf32>
    %3 = tpu.matmul %2, %0, %cst {dimension_numbers = #tpu.dot_dimension_numbers<[1], [0], [0], [1], [0, 0, 1, 1], [], []>} : vector<4x4xbf16>, vector<4x64xbf16>, vector<4x64xf32> -> vector<4x64xf32>
    %4 = arith.truncf %3 : vector<4x64xf32> to vector<4x64xbf16>
    %c0_5 = arith.constant 0 : index
    %c0_6 = arith.constant 0 : index
    %c0_7 = arith.constant 0 : index
    %c0_8 = arith.constant 0 : index
    %5 = vector.load %arg3[%c0_5, %c0_6, %c0_7, %c0_8] : memref<1x15x4x64xbf16, #tpu.memory_space<vmem>>, vector<1x1x4x64xbf16>
    %6 = vector.shape_cast %5 : vector<1x1x4x64xbf16> to vector<4x64xbf16>
    %7 = vector.shape_cast %4 : vector<4x64xbf16> to vector<1x1x4x64xbf16>
    tpu.vector_store %arg3[%c0_5, %c0_6, %c0_7, %c0_8], %7 {strides = array<i32>} : memref<1x15x4x64xbf16, #tpu.memory_space<vmem>>, vector<1x1x4x64xbf16>,
    %c0_9 = arith.constant 0 : index
    %c1 = arith.constant 1 : index
    %c0_10 = arith.constant 0 : index
    %c0_11 = arith.constant 0 : index
    %8 = vector.load %arg1[%c0_9, %c1, %c0_10, %c0_11] : memref<1x15x4x4xbf16, #tpu.memory_space<vmem>>, vector<1x1x4x4xbf16>
    %9 = vector.shape_cast %8 : vector<1x1x4x4xbf16> to vector<4x4xbf16>
    %cst_12 = arith.constant dense<0.000000e+00> : vector<4x64xf32>
    %10 = tpu.matmul %9, %0, %cst_12 {dimension_numbers = #tpu.dot_dimension_numbers<[1], [0], [0], [1], [0, 0, 1, 1], [], []>} : vector<4x4xbf16>, vector<4x64xbf16>, vector<4x64xf32> -> vector<4x64xf32>
    %11 = arith.truncf %10 : vector<4x64xf32> to vector<4x64xbf16>
    %c0_13 = arith.constant 0 : index
    %c1_14 = arith.constant 1 : index
    %c0_15 = arith.constant 0 : index
    %c0_16 = arith.constant 0 : index
    %12 = vector.load %arg3[%c0_13, %c1_14, %c0_15, %c0_16] : memref<1x15x4x64xbf16, #tpu.memory_space<vmem>>, vector<1x1x4x64xbf16>
    %13 = vector.shape_cast %12 : vector<1x1x4x64xbf16> to vector<4x64xbf16>
    %14 = vector.shape_cast %11 : vector<4x64xbf16> to vector<1x1x4x64xbf16>
    tpu.vector_store %arg3[%c0_13, %c1_14, %c0_15, %c0_16], %14 {strides = array<i32>} : memref<1x15x4x64xbf16, #tpu.memory_space<vmem>>, vector<1x1x4x64xbf16>,
    %c0_17 = arith.constant 0 : index
    %c2 = arith.constant 2 : index
    %c0_18 = arith.constant 0 : index
    %c0_19 = arith.constant 0 : index
    %15 = vector.load %arg1[%c0_17, %c2, %c0_18, %c0_19] : memref<1x15x4x4xbf16, #tpu.memory_space<vmem>>, vector<1x1x4x4xbf16>
    %16 = vector.shape_cast %15 : vector<1x1x4x4xbf16> to vector<4x4xbf16>
    %cst_20 = arith.constant dense<0.000000e+00> : vector<4x64xf32>
    %17 = tpu.matmul %16, %0, %cst_20 {dimension_numbers = #tpu.dot_dimension_numbers<[1], [0], [0], [1], [0, 0, 1, 1], [], []>} : vector<4x4xbf16>, vector<4x64xbf16>, vector<4x64xf32> -> vector<4x64xf32>
    %18 = arith.truncf %17 : vector<4x64xf32> to vector<4x64xbf16>
    %c0_21 = arith.constant 0 : index
    %c2_22 = arith.constant 2 : index
    %c0_23 = arith.constant 0 : index
    %c0_24 = arith.constant 0 : index
    %19 = vector.load %arg3[%c0_21, %c2_22, %c0_23, %c0_24] : memref<1x15x4x64xbf16, #tpu.memory_space<vmem>>, vector<1x1x4x64xbf16>
    %20 = vector.shape_cast %19 : vector<1x1x4x64xbf16> to vector<4x64xbf16>
    %21 = vector.shape_cast %18 : vector<4x64xbf16> to vector<1x1x4x64xbf16>
    tpu.vector_store %arg3[%c0_21, %c2_22, %c0_23, %c0_24], %21 {strides = array<i32>} : memref<1x15x4x64xbf16, #tpu.memory_space<vmem>>, vector<1x1x4x64xbf16>,
    %c0_25 = arith.constant 0 : index
    %c3 = arith.constant 3 : index
    %c0_26 = arith.constant 0 : index
    %c0_27 = arith.constant 0 : index
    %22 = vector.load %arg1[%c0_25, %c3, %c0_26, %c0_27] : memref<1x15x4x4xbf16, #tpu.memory_space<vmem>>, vector<1x1x4x4xbf16>
    %23 = vector.shape_cast %22 : vector<1x1x4x4xbf16> to vector<4x4xbf16>
    %cst_28 = arith.constant dense<0.000000e+00> : vector<4x64xf32>
    %24 = tpu.matmul %23, %0, %cst_28 {dimension_numbers = #tpu.dot_dimension_numbers<[1], [0], [0], [1], [0, 0, 1, 1], [], []>} : vector<4x4xbf16>, vector<4x64xbf16>, vector<4x64xf32> -> vector<4x64xf32>
    %25 = arith.truncf %24 : vector<4x64xf32> to vector<4x64xbf16>
    %c0_29 = arith.constant 0 : index
    %c3_30 = arith.constant 3 : index
    %c0_31 = arith.constant 0 : index
    %c0_32 = arith.constant 0 : index
    %26 = vector.load %arg3[%c0_29, %c3_30, %c0_31, %c0_32] : memref<1x15x4x64xbf16, #tpu.memory_space<vmem>>, vector<1x1x4x64xbf16>
    %27 = vector.shape_cast %26 : vector<1x1x4x64xbf16> to vector<4x64xbf16>
    %28 = vector.shape_cast %25 : vector<4x64xbf16> to vector<1x1x4x64xbf16>
    tpu.vector_store %arg3[%c0_29, %c3_30, %c0_31, %c0_32], %28 {strides = array<i32>} : memref<1x15x4x64xbf16, #tpu.memory_space<vmem>>, vector<1x1x4x64xbf16>,
    %c0_33 = arith.constant 0 : index
    %c4 = arith.constant 4 : index
    %c0_34 = arith.constant 0 : index
    %c0_35 = arith.constant 0 : index
    %29 = vector.load %arg1[%c0_33, %c4, %c0_34, %c0_35] : memref<1x15x4x4xbf16, #tpu.memory_space<vmem>>, vector<1x1x4x4xbf16>
    %30 = vector.shape_cast %29 : vector<1x1x4x4xbf16> to vector<4x4xbf16>
    %cst_36 = arith.constant dense<0.000000e+00> : vector<4x64xf32>
    %31 = tpu.matmul %30, %0, %cst_36 {dimension_numbers = #tpu.dot_dimension_numbers<[1], [0], [0], [1], [0, 0, 1, 1], [], []>} : vector<4x4xbf16>, vector<4x64xbf16>, vector<4x64xf32> -> vector<4x64xf32>
    %32 = arith.truncf %31 : vector<4x64xf32> to vector<4x64xbf16>
    %c0_37 = arith.constant 0 : index
    %c4_38 = arith.constant 4 : index
    %c0_39 = arith.constant 0 : index
    %c0_40 = arith.constant 0 : index
    %33 = vector.load %arg3[%c0_37, %c4_38, %c0_39, %c0_40] : memref<1x15x4x64xbf16, #tpu.memory_space<vmem>>, vector<1x1x4x64xbf16>
    %34 = vector.shape_cast %33 : vector<1x1x4x64xbf16> to vector<4x64xbf16>
    %35 = vector.shape_cast %32 : vector<4x64xbf16> to vector<1x1x4x64xbf16>
    tpu.vector_store %arg3[%c0_37, %c4_38, %c0_39, %c0_40], %35 {strides = array<i32>} : memref<1x15x4x64xbf16, #tpu.memory_space<vmem>>, vector<1x1x4x64xbf16>,
    %c0_41 = arith.constant 0 : index
    %c5 = arith.constant 5 : index
    %c0_42 = arith.constant 0 : index
    %c0_43 = arith.constant 0 : index
    %36 = vector.load %arg1[%c0_41, %c5, %c0_42, %c0_43] : memref<1x15x4x4xbf16, #tpu.memory_space<vmem>>, vector<1x1x4x4xbf16>
    %37 = vector.shape_cast %36 : vector<1x1x4x4xbf16> to vector<4x4xbf16>
    %cst_44 = arith.constant dense<0.000000e+00> : vector<4x64xf32>
    %38 = tpu.matmul %37, %0, %cst_44 {dimension_numbers = #tpu.dot_dimension_numbers<[1], [0], [0], [1], [0, 0, 1, 1], [], []>} : vector<4x4xbf16>, vector<4x64xbf16>, vector<4x64xf32> -> vector<4x64xf32>
    %39 = arith.truncf %38 : vector<4x64xf32> to vector<4x64xbf16>
    %c0_45 = arith.constant 0 : index
    %c5_46 = arith.constant 5 : index
    %c0_47 = arith.constant 0 : index
    %c0_48 = arith.constant 0 : index
    %40 = vector.load %arg3[%c0_45, %c5_46, %c0_47, %c0_48] : memref<1x15x4x64xbf16, #tpu.memory_space<vmem>>, vector<1x1x4x64xbf16>
    %41 = vector.shape_cast %40 : vector<1x1x4x64xbf16> to vector<4x64xbf16>
    %42 = vector.shape_cast %39 : vector<4x64xbf16> to vector<1x1x4x64xbf16>
    tpu.vector_store %arg3[%c0_45, %c5_46, %c0_47, %c0_48], %42 {strides = array<i32>} : memref<1x15x4x64xbf16, #tpu.memory_space<vmem>>, vector<1x1x4x64xbf16>,
    %c0_49 = arith.constant 0 : index
    %c6 = arith.constant 6 : index
    %c0_50 = arith.constant 0 : index
    %c0_51 = arith.constant 0 : index
    %43 = vector.load %arg1[%c0_49, %c6, %c0_50, %c0_51] : memref<1x15x4x4xbf16, #tpu.memory_space<vmem>>, vector<1x1x4x4xbf16>
    %44 = vector.shape_cast %43 : vector<1x1x4x4xbf16> to vector<4x4xbf16>
    %cst_52 = arith.constant dense<0.000000e+00> : vector<4x64xf32>
    %45 = tpu.matmul %44, %0, %cst_52 {dimension_numbers = #tpu.dot_dimension_numbers<[1], [0], [0], [1], [0, 0, 1, 1], [], []>} : vector<4x4xbf16>, vector<4x64xbf16>, vector<4x64xf32> -> vector<4x64xf32>
    %46 = arith.truncf %45 : vector<4x64xf32> to vector<4x64xbf16>
    %c0_53 = arith.constant 0 : index
    %c6_54 = arith.constant 6 : index
    %c0_55 = arith.constant 0 : index
    %c0_56 = arith.constant 0 : index
    %47 = vector.load %arg3[%c0_53, %c6_54, %c0_55, %c0_56] : memref<1x15x4x64xbf16, #tpu.memory_space<vmem>>, vector<1x1x4x64xbf16>
    %48 = vector.shape_cast %47 : vector<1x1x4x64xbf16> to vector<4x64xbf16>
    %49 = vector.shape_cast %46 : vector<4x64xbf16> to vector<1x1x4x64xbf16>
    tpu.vector_store %arg3[%c0_53, %c6_54, %c0_55, %c0_56], %49 {strides = array<i32>} : memref<1x15x4x64xbf16, #tpu.memory_space<vmem>>, vector<1x1x4x64xbf16>,
    %c0_57 = arith.constant 0 : index
    %c7 = arith.constant 7 : index
    %c0_58 = arith.constant 0 : index
    %c0_59 = arith.constant 0 : index
    %50 = vector.load %arg1[%c0_57, %c7, %c0_58, %c0_59] : memref<1x15x4x4xbf16, #tpu.memory_space<vmem>>, vector<1x1x4x4xbf16>
    %51 = vector.shape_cast %50 : vector<1x1x4x4xbf16> to vector<4x4xbf16>
    %cst_60 = arith.constant dense<0.000000e+00> : vector<4x64xf32>
    %52 = tpu.matmul %51, %0, %cst_60 {dimension_numbers = #tpu.dot_dimension_numbers<[1], [0], [0], [1], [0, 0, 1, 1], [], []>} : vector<4x4xbf16>, vector<4x64xbf16>, vector<4x64xf32> -> vector<4x64xf32>
    %53 = arith.truncf %52 : vector<4x64xf32> to vector<4x64xbf16>
    %c0_61 = arith.constant 0 : index
    %c7_62 = arith.constant 7 : index
    %c0_63 = arith.constant 0 : index
    %c0_64 = arith.constant 0 : index
    %54 = vector.load %arg3[%c0_61, %c7_62, %c0_63, %c0_64] : memref<1x15x4x64xbf16, #tpu.memory_space<vmem>>, vector<1x1x4x64xbf16>
    %55 = vector.shape_cast %54 : vector<1x1x4x64xbf16> to vector<4x64xbf16>
    %56 = vector.shape_cast %53 : vector<4x64xbf16> to vector<1x1x4x64xbf16>
    tpu.vector_store %arg3[%c0_61, %c7_62, %c0_63, %c0_64], %56 {strides = array<i32>} : memref<1x15x4x64xbf16, #tpu.memory_space<vmem>>, vector<1x1x4x64xbf16>,
    %c0_65 = arith.constant 0 : index
    %c8 = arith.constant 8 : index
    %c0_66 = arith.constant 0 : index
    %c0_67 = arith.constant 0 : index
    %57 = vector.load %arg1[%c0_65, %c8, %c0_66, %c0_67] : memref<1x15x4x4xbf16, #tpu.memory_space<vmem>>, vector<1x1x4x4xbf16>
    %58 = vector.shape_cast %57 : vector<1x1x4x4xbf16> to vector<4x4xbf16>
    %cst_68 = arith.constant dense<0.000000e+00> : vector<4x64xf32>
    %59 = tpu.matmul %58, %0, %cst_68 {dimension_numbers = #tpu.dot_dimension_numbers<[1], [0], [0], [1], [0, 0, 1, 1], [], []>} : vector<4x4xbf16>, vector<4x64xbf16>, vector<4x64xf32> -> vector<4x64xf32>
    %60 = arith.truncf %59 : vector<4x64xf32> to vector<4x64xbf16>
    %c0_69 = arith.constant 0 : index
    %c8_70 = arith.constant 8 : index
    %c0_71 = arith.constant 0 : index
    %c0_72 = arith.constant 0 : index
    %61 = vector.load %arg3[%c0_69, %c8_70, %c0_71, %c0_72] : memref<1x15x4x64xbf16, #tpu.memory_space<vmem>>, vector<1x1x4x64xbf16>
    %62 = vector.shape_cast %61 : vector<1x1x4x64xbf16> to vector<4x64xbf16>
    %63 = vector.shape_cast %60 : vector<4x64xbf16> to vector<1x1x4x64xbf16>
    tpu.vector_store %arg3[%c0_69, %c8_70, %c0_71, %c0_72], %63 {strides = array<i32>} : memref<1x15x4x64xbf16, #tpu.memory_space<vmem>>, vector<1x1x4x64xbf16>,
    %c0_73 = arith.constant 0 : index
    %c9 = arith.constant 9 : index
    %c0_74 = arith.constant 0 : index
    %c0_75 = arith.constant 0 : index
    %64 = vector.load %arg1[%c0_73, %c9, %c0_74, %c0_75] : memref<1x15x4x4xbf16, #tpu.memory_space<vmem>>, vector<1x1x4x4xbf16>
    %65 = vector.shape_cast %64 : vector<1x1x4x4xbf16> to vector<4x4xbf16>
    %cst_76 = arith.constant dense<0.000000e+00> : vector<4x64xf32>
    %66 = tpu.matmul %65, %0, %cst_76 {dimension_numbers = #tpu.dot_dimension_numbers<[1], [0], [0], [1], [0, 0, 1, 1], [], []>} : vector<4x4xbf16>, vector<4x64xbf16>, vector<4x64xf32> -> vector<4x64xf32>
    %67 = arith.truncf %66 : vector<4x64xf32> to vector<4x64xbf16>
    %c0_77 = arith.constant 0 : index
    %c9_78 = arith.constant 9 : index
    %c0_79 = arith.constant 0 : index
    %c0_80 = arith.constant 0 : index
    %68 = vector.load %arg3[%c0_77, %c9_78, %c0_79, %c0_80] : memref<1x15x4x64xbf16, #tpu.memory_space<vmem>>, vector<1x1x4x64xbf16>
    %69 = vector.shape_cast %68 : vector<1x1x4x64xbf16> to vector<4x64xbf16>
    %70 = vector.shape_cast %67 : vector<4x64xbf16> to vector<1x1x4x64xbf16>
    tpu.vector_store %arg3[%c0_77, %c9_78, %c0_79, %c0_80], %70 {strides = array<i32>} : memref<1x15x4x64xbf16, #tpu.memory_space<vmem>>, vector<1x1x4x64xbf16>,
    %c0_81 = arith.constant 0 : index
    %c10 = arith.constant 10 : index
    %c0_82 = arith.constant 0 : index
    %c0_83 = arith.constant 0 : index
    %71 = vector.load %arg1[%c0_81, %c10, %c0_82, %c0_83] : memref<1x15x4x4xbf16, #tpu.memory_space<vmem>>, vector<1x1x4x4xbf16>
    %72 = vector.shape_cast %71 : vector<1x1x4x4xbf16> to vector<4x4xbf16>
    %cst_84 = arith.constant dense<0.000000e+00> : vector<4x64xf32>
    %73 = tpu.matmul %72, %0, %cst_84 {dimension_numbers = #tpu.dot_dimension_numbers<[1], [0], [0], [1], [0, 0, 1, 1], [], []>} : vector<4x4xbf16>, vector<4x64xbf16>, vector<4x64xf32> -> vector<4x64xf32>
    %74 = arith.truncf %73 : vector<4x64xf32> to vector<4x64xbf16>
    %c0_85 = arith.constant 0 : index
    %c10_86 = arith.constant 10 : index
    %c0_87 = arith.constant 0 : index
    %c0_88 = arith.constant 0 : index
    %75 = vector.load %arg3[%c0_85, %c10_86, %c0_87, %c0_88] : memref<1x15x4x64xbf16, #tpu.memory_space<vmem>>, vector<1x1x4x64xbf16>
    %76 = vector.shape_cast %75 : vector<1x1x4x64xbf16> to vector<4x64xbf16>
    %77 = vector.shape_cast %74 : vector<4x64xbf16> to vector<1x1x4x64xbf16>
    tpu.vector_store %arg3[%c0_85, %c10_86, %c0_87, %c0_88], %77 {strides = array<i32>} : memref<1x15x4x64xbf16, #tpu.memory_space<vmem>>, vector<1x1x4x64xbf16>,
    %c0_89 = arith.constant 0 : index
    %c11 = arith.constant 11 : index
    %c0_90 = arith.constant 0 : index
    %c0_91 = arith.constant 0 : index
    %78 = vector.load %arg1[%c0_89, %c11, %c0_90, %c0_91] : memref<1x15x4x4xbf16, #tpu.memory_space<vmem>>, vector<1x1x4x4xbf16>
    %79 = vector.shape_cast %78 : vector<1x1x4x4xbf16> to vector<4x4xbf16>
    %cst_92 = arith.constant dense<0.000000e+00> : vector<4x64xf32>
    %80 = tpu.matmul %79, %0, %cst_92 {dimension_numbers = #tpu.dot_dimension_numbers<[1], [0], [0], [1], [0, 0, 1, 1], [], []>} : vector<4x4xbf16>, vector<4x64xbf16>, vector<4x64xf32> -> vector<4x64xf32>
    %81 = arith.truncf %80 : vector<4x64xf32> to vector<4x64xbf16>
    %c0_93 = arith.constant 0 : index
    %c11_94 = arith.constant 11 : index
    %c0_95 = arith.constant 0 : index
    %c0_96 = arith.constant 0 : index
    %82 = vector.load %arg3[%c0_93, %c11_94, %c0_95, %c0_96] : memref<1x15x4x64xbf16, #tpu.memory_space<vmem>>, vector<1x1x4x64xbf16>
    %83 = vector.shape_cast %82 : vector<1x1x4x64xbf16> to vector<4x64xbf16>
    %84 = vector.shape_cast %81 : vector<4x64xbf16> to vector<1x1x4x64xbf16>
    tpu.vector_store %arg3[%c0_93, %c11_94, %c0_95, %c0_96], %84 {strides = array<i32>} : memref<1x15x4x64xbf16, #tpu.memory_space<vmem>>, vector<1x1x4x64xbf16>,
    %c0_97 = arith.constant 0 : index
    %c12 = arith.constant 12 : index
    %c0_98 = arith.constant 0 : index
    %c0_99 = arith.constant 0 : index
    %85 = vector.load %arg1[%c0_97, %c12, %c0_98, %c0_99] : memref<1x15x4x4xbf16, #tpu.memory_space<vmem>>, vector<1x1x4x4xbf16>
    %86 = vector.shape_cast %85 : vector<1x1x4x4xbf16> to vector<4x4xbf16>
    %cst_100 = arith.constant dense<0.000000e+00> : vector<4x64xf32>
    %87 = tpu.matmul %86, %0, %cst_100 {dimension_numbers = #tpu.dot_dimension_numbers<[1], [0], [0], [1], [0, 0, 1, 1], [], []>} : vector<4x4xbf16>, vector<4x64xbf16>, vector<4x64xf32> -> vector<4x64xf32>
    %88 = arith.truncf %87 : vector<4x64xf32> to vector<4x64xbf16>
    %c0_101 = arith.constant 0 : index
    %c12_102 = arith.constant 12 : index
    %c0_103 = arith.constant 0 : index
    %c0_104 = arith.constant 0 : index
    %89 = vector.load %arg3[%c0_101, %c12_102, %c0_103, %c0_104] : memref<1x15x4x64xbf16, #tpu.memory_space<vmem>>, vector<1x1x4x64xbf16>
    %90 = vector.shape_cast %89 : vector<1x1x4x64xbf16> to vector<4x64xbf16>
    %91 = vector.shape_cast %88 : vector<4x64xbf16> to vector<1x1x4x64xbf16>
    tpu.vector_store %arg3[%c0_101, %c12_102, %c0_103, %c0_104], %91 {strides = array<i32>} : memref<1x15x4x64xbf16, #tpu.memory_space<vmem>>, vector<1x1x4x64xbf16>,
    %c0_105 = arith.constant 0 : index
    %c13 = arith.constant 13 : index
    %c0_106 = arith.constant 0 : index
    %c0_107 = arith.constant 0 : index
    %92 = vector.load %arg1[%c0_105, %c13, %c0_106, %c0_107] : memref<1x15x4x4xbf16, #tpu.memory_space<vmem>>, vector<1x1x4x4xbf16>
    %93 = vector.shape_cast %92 : vector<1x1x4x4xbf16> to vector<4x4xbf16>
    %cst_108 = arith.constant dense<0.000000e+00> : vector<4x64xf32>
    %94 = tpu.matmul %93, %0, %cst_108 {dimension_numbers = #tpu.dot_dimension_numbers<[1], [0], [0], [1], [0, 0, 1, 1], [], []>} : vector<4x4xbf16>, vector<4x64xbf16>, vector<4x64xf32> -> vector<4x64xf32>
    %95 = arith.truncf %94 : vector<4x64xf32> to vector<4x64xbf16>
    %c0_109 = arith.constant 0 : index
    %c13_110 = arith.constant 13 : index
    %c0_111 = arith.constant 0 : index
    %c0_112 = arith.constant 0 : index
    %96 = vector.load %arg3[%c0_109, %c13_110, %c0_111, %c0_112] : memref<1x15x4x64xbf16, #tpu.memory_space<vmem>>, vector<1x1x4x64xbf16>
    %97 = vector.shape_cast %96 : vector<1x1x4x64xbf16> to vector<4x64xbf16>
    %98 = vector.shape_cast %95 : vector<4x64xbf16> to vector<1x1x4x64xbf16>
    tpu.vector_store %arg3[%c0_109, %c13_110, %c0_111, %c0_112], %98 {strides = array<i32>} : memref<1x15x4x64xbf16, #tpu.memory_space<vmem>>, vector<1x1x4x64xbf16>,
    %c0_113 = arith.constant 0 : index
    %c14 = arith.constant 14 : index
    %c0_114 = arith.constant 0 : index
    %c0_115 = arith.constant 0 : index
    %99 = vector.load %arg1[%c0_113, %c14, %c0_114, %c0_115] : memref<1x15x4x4xbf16, #tpu.memory_space<vmem>>, vector<1x1x4x4xbf16>
    %100 = vector.shape_cast %99 : vector<1x1x4x4xbf16> to vector<4x4xbf16>
    %cst_116 = arith.constant dense<0.000000e+00> : vector<4x64xf32>
    %101 = tpu.matmul %100, %0, %cst_116 {dimension_numbers = #tpu.dot_dimension_numbers<[1], [0], [0], [1], [0, 0, 1, 1], [], []>} : vector<4x4xbf16>, vector<4x64xbf16>, vector<4x64xf32> -> vector<4x64xf32>
    %102 = arith.truncf %101 : vector<4x64xf32> to vector<4x64xbf16>
    %c0_117 = arith.constant 0 : index
    %c14_118 = arith.constant 14 : index
    %c0_119 = arith.constant 0 : index
    %c0_120 = arith.constant 0 : index
    %103 = vector.load %arg3[%c0_117, %c14_118, %c0_119, %c0_120] : memref<1x15x4x64xbf16, #tpu.memory_space<vmem>>, vector<1x1x4x64xbf16>
    %104 = vector.shape_cast %103 : vector<1x1x4x64xbf16> to vector<4x64xbf16>
    %105 = vector.shape_cast %102 : vector<4x64xbf16> to vector<1x1x4x64xbf16>
    tpu.vector_store %arg3[%c0_117, %c14_118, %c0_119, %c0_120], %105 {strides = array<i32>} : memref<1x15x4x64xbf16, #tpu.memory_space<vmem>>, vector<1x1x4x64xbf16>,
    return
  }
  func.func @transform_0(%arg0: i32) -> (i32, i32, i32, i32) {
    %c0_i32 = arith.constant 0 : i32
    %c0_i32_0 = arith.constant 0 : i32
    %c0_i32_1 = arith.constant 0 : i32
    %c0_i32_2 = arith.constant 0 : i32
    return %arg0, %c0_i32, %c0_i32_0, %c0_i32_1 : i32, i32, i32, i32
  }
  func.func @transform_1(%arg0: i32) -> (i32, i32) {
    %c0_i32 = arith.constant 0 : i32
    %c0_i32_0 = arith.constant 0 : i32
    %c0_i32_1 = arith.constant 0 : i32
    return %c0_i32, %c0_i32_0 : i32, i32
  }
  func.func @transform_2(%arg0: i32) -> (i32, i32, i32, i32) {
    %c0_i32 = arith.constant 0 : i32
    %c0_i32_0 = arith.constant 0 : i32
    %c0_i32_1 = arith.constant 0 : i32
    %c0_i32_2 = arith.constant 0 : i32
    return %arg0, %c0_i32, %c0_i32_0, %c0_i32_1 : i32, i32, i32, i32
  }
}

</mosaic_0001>

<bundles_post_ra>
// kernel: network_forward.3
= control target key start
LH: loop header
LB: loop body
LE: loop exit
PB: predicated region body
PF: predicated region fallthrough
CT: control target
= control target key end

     0   :  { %s1030_s12 = smov 0   ;;  %s1125_s0 = inlined_call_operand.vmem [shape: bf16[2,768,16], index: 0, kind: input, shape index: {}]   ;;  %s1126_s1 = inlined_call_operand.vmem [shape: bf16[15,768], index: 1, kind: input, shape index: {}]   ;;  %s1127_s2 = inlined_call_operand.vmem [shape: f32[15,1], index: 2, kind: input, shape index: {}]   ;;  %s1128_s3 = inlined_call_operand.vmem [shape: bf16[2,15,16], index: 3, kind: output, shape index: {}]  }
   0x1 LB: > { %s798_s13 = sadd.s32 4294967295, %s1007_s12   ;;  %p802_p0 = scmp.ge.s32.totalorder %s1007_s12, 1  ;;  %s1007_s12 = sphi %s1030_s12, %s13_s12  }
   0x2   : > { %p137_p1 = scmp.lt.s32.totalorder %s1007_s12, 3 }
   0x4   : > { %p138_p2 = pnand %p802_p0, %p137_p1 }
   0x5   : > { %p161_p3 = scmp.lt.s32.totalorder (!%p138_p2), %s798_s13, 1  ;;  %v977_v0 = vld [vmem:[%s1126_s1 + $0x4] ss:$24 sps:$4 sm:$0xff] (!%p138_p2)   ;;  %v1009_v1 = vmov (!%p138_p2), 0   ;;  %v275_v3 = vld [vmem:[%s1127_s2 + $0x8] sm:$0x7f] (!%p138_p2) }
   0x6   : > { %141 = sbr.rel (%p138_p2) target bundleno = 305 (0x131), region = 32  ;;  %943 = vset.pattern.permute.xlu0 (!%p138_p2), %v1009_v1  ;;  %v982_v2 = vld [vmem:[%s1126_s1 + $0xc] ss:$24 sps:$4 sm:$0xff] (!%p138_p2)   ;;  %636 = vmatprep.mubr.bf16.mxu0 (!%p138_p2), %v977_v0  ;;  %v975_v34 = vld [vmem:[%s1126_s1] ss:$24 sps:$4 sm:$0xff] (!%p138_p2)   ;;  %vm735_vm0 = vcmask (!%p138_p2), 125952  }
   0x7   : > { %677 = vmatprep.mubr.bf16.mxu1 (!%p138_p2), %v982_v2  ;;  %283 = vperm.xlu0 (!%p138_p2), %943, %v275_v3   ;;  %v274_v4 = vld [vmem:[%s1127_s2] sm:$0xff] (!%p138_p2)  ;;  %v1000_v36 = vld [vmem:[%s1126_s1 + $0x14] ss:$24 sps:$4 sm:$0xff] (!%p138_p2)   ;;  %v998_v56 = vld [vmem:[%s1126_s1 + $0x10] ss:$24 sps:$4 sm:$0xff] (!%p138_p2)  }
   0x8   : > { %v980_v38 = vld [vmem:[%s1126_s1 + $0x8] ss:$24 sps:$4 sm:$0xff] (!%p138_p2)   ;;  %vm738_vm1 = vsmask.f32 (!%p138_p2), 3328 }
   0x9   : > { %vm739_vm2 = vmand (!%p138_p2), %vm735_vm0, %vm738_vm1 }
   0xb   : > { %278 = vperm.xlu0 (!%p138_p2), %943, %v274_v4  }
   0xd   : > { %s1130_s13 = smov (!%p161_p3, %s798_s13), 1 }
   0xe   : > { %s933_s18 = smul.u32 384, %s1130_s13  ;;  %s864_s7 = sshll.u32 %s1130_s13, 3 }
   0xf   : > { %s170_s10 = scalar_lea.vmem %s1128_s3, %s864_s7 }
  0x10   : > { %s1053_s23 = scalar_lea.vmem %s1125_s0, %s933_s18 }
  0x11   : > { %v944_v5 = vld [vmem:[%s1053_s23 + $0x40] sm:$0xff]   ;;  %v948_v9 = vld [vmem:[%s1053_s23 + $0x48] sm:$0xff]   ;;  %v952_v13 = vld [vmem:[%s1053_s23 + $0x50] sm:$0xff]  }
  0x12   : > { %v945_v6 = vld [vmem:[%s1053_s23] sm:$0xff]   ;;  %867 = vmatprep.subr.bf16.mxu0 %v944_v5  ;;  %v949_v10 = vld [vmem:[%s1053_s23 + $0x8] sm:$0xff]   ;;  %v953_v14 = vld [vmem:[%s1053_s23 + $0x10] sm:$0xff]  }
  0x13   : > { %v946_v7 = vld [vmem:[%s1053_s23 + $0xc0] sm:$0xff]   ;;  %868 = vmatpush3.bf16.msra.mxu0 %v945_v6  ;;  %v950_v11 = vld [vmem:[%s1053_s23 + $0xc8] sm:$0xff]   ;;  %v954_v15 = vld [vmem:[%s1053_s23 + $0xd0] sm:$0xff]  }
  0x14   : > { %v947_v8 = vld [vmem:[%s1053_s23 + $0x80] sm:$0xff]   ;;  %889 = vmatprep.subr.bf16.mxu1 %v946_v7  ;;  %869 = vmatprep.subr.bf16.mxu0 %v948_v9  ;;  %v951_v12 = vld [vmem:[%s1053_s23 + $0x88] sm:$0xff]   ;;  %v955_v16 = vld [vmem:[%s1053_s23 + $0x90] sm:$0xff]  }
  0x15   : > { %890 = vmatpush3.bf16.msra.mxu1 %v947_v8  ;;  %v956_v17 = vld [vmem:[%s1053_s23 + $0x58] sm:$0xff]   ;;  %v960_v21 = vld [vmem:[%s1053_s23 + $0x60] sm:$0xff]   ;;  %v964_v25 = vld [vmem:[%s1053_s23 + $0x68] sm:$0xff]  }
  0x16   : > { %891 = vmatprep.subr.bf16.mxu1 %v950_v11  ;;  %v957_v18 = vld [vmem:[%s1053_s23 + $0x18] sm:$0xff]   ;;  %v961_v22 = vld [vmem:[%s1053_s23 + $0x20] sm:$0xff]   ;;  %v965_v26 = vld [vmem:[%s1053_s23 + $0x28] sm:$0xff]  }
  0x17   : > { %870 = vmatpush3.bf16.msra.mxu0 %v949_v10  ;;  %v958_v19 = vld [vmem:[%s1053_s23 + $0xd8] sm:$0xff]   ;;  %v962_v23 = vld [vmem:[%s1053_s23 + $0xe0] sm:$0xff]   ;;  %v966_v27 = vld [vmem:[%s1053_s23 + $0xe8] sm:$0xff]  }
  0x18   : > { %871 = vmatprep.subr.bf16.mxu0 %v952_v13  ;;  %v959_v20 = vld [vmem:[%s1053_s23 + $0x98] sm:$0xff]   ;;  %v963_v24 = vld [vmem:[%s1053_s23 + $0xa0] sm:$0xff]   ;;  %v967_v28 = vld [vmem:[%s1053_s23 + $0xa8] sm:$0xff]  }
  0x19   : > { %892 = vmatpush3.bf16.msra.mxu1 %v951_v12  ;;  %v968_v29 = vld [vmem:[%s1053_s23 + $0x70] sm:$0xff]   ;;  %v972_v33 = vld [vmem:[%s1053_s23 + $0x78] sm:$0xff]   ;;  %v979_v40 = vld [vmem:[%s1053_s23 + $0x140] sm:$0xff]  }
  0x1a   : > { %893 = vmatprep.subr.bf16.mxu1 %v954_v15  ;;  %v969_v30 = vld [vmem:[%s1053_s23 + $0x30] sm:$0xff]   ;;  %v973_v35 = vld [vmem:[%s1053_s23 + $0x38] sm:$0xff]   ;;  %v983_v41 = vld [vmem:[%s1053_s23 + $0x100] sm:$0xff]  }
  0x1b   : > { %872 = vmatpush3.bf16.msra.mxu0 %v953_v14  ;;  %v970_v31 = vld [vmem:[%s1053_s23 + $0xf0] sm:$0xff]   ;;  %v974_v37 = vld [vmem:[%s1053_s23 + $0xf8] sm:$0xff]   ;;  %v984_v42 = vld [vmem:[%s1053_s23 + $0x148] sm:$0xff]  }
  0x1c   : > { %873 = vmatprep.subr.bf16.mxu0 %v956_v17  ;;  %v971_v32 = vld [vmem:[%s1053_s23 + $0xb0] sm:$0xff]   ;;  %v978_v39 = vld [vmem:[%s1053_s23 + $0xb8] sm:$0xff]   ;;  %v985_v43 = vld [vmem:[%s1053_s23 + $0x108] sm:$0xff]  }
  0x1d   : > { %894 = vmatpush3.bf16.msra.mxu1 %v955_v16  ;;  %v986_v44 = vld [vmem:[%s1053_s23 + $0x150] sm:$0xff]   ;;  %v988_v46 = vld [vmem:[%s1053_s23 + $0x158] sm:$0xff]   ;;  %v990_v48 = vld [vmem:[%s1053_s23 + $0x160] sm:$0xff]  }
  0x1e   : > { %895 = vmatprep.subr.bf16.mxu1 %v958_v19  ;;  %v987_v45 = vld [vmem:[%s1053_s23 + $0x110] sm:$0xff]   ;;  %v989_v47 = vld [vmem:[%s1053_s23 + $0x118] sm:$0xff]   ;;  %v991_v49 = vld [vmem:[%s1053_s23 + $0x120] sm:$0xff]  }
  0x1f   : > { %874 = vmatpush3.bf16.msra.mxu0 %v957_v18  ;;  %v992_v50 = vld [vmem:[%s1053_s23 + $0x168] sm:$0xff]   ;;  %v994_v52 = vld [vmem:[%s1053_s23 + $0x170] sm:$0xff]   ;;  %v996_v54 = vld [vmem:[%s1053_s23 + $0x178] sm:$0xff]  }
  0x20   : > { %875 = vmatprep.subr.bf16.mxu0 %v960_v21  ;;  %v993_v51 = vld [vmem:[%s1053_s23 + $0x128] sm:$0xff]   ;;  %v995_v53 = vld [vmem:[%s1053_s23 + $0x130] sm:$0xff]   ;;  %v997_v55 = vld [vmem:[%s1053_s23 + $0x138] sm:$0xff]  }
  0x21   : > { %896 = vmatpush3.bf16.msra.mxu1 %v959_v20  ;;  %v740_v20 = vld [vmem:[%s170_s10 + $0x4] sm:$0xf] }
  0x22   : > { %897 = vmatprep.subr.bf16.mxu1 %v962_v23 }
  0x23   : > { %876 = vmatpush3.bf16.msra.mxu0 %v961_v22 }
  0x24   : > { %877 = vmatprep.subr.bf16.mxu0 %v964_v25 }
  0x25   : > { %898 = vmatpush3.bf16.msra.mxu1 %v963_v24 }
  0x26   : > { %899 = vmatprep.subr.bf16.mxu1 %v966_v27 }
  0x27   : > { %878 = vmatpush3.bf16.msra.mxu0 %v965_v26 }
  0x28   : > { %879 = vmatprep.subr.bf16.mxu0 %v968_v29 }
  0x29   : > { %900 = vmatpush3.bf16.msra.mxu1 %v967_v28 }
  0x2a   : > { %901 = vmatprep.subr.bf16.mxu1 %v970_v31 }
  0x2b   : > { %880 = vmatpush3.bf16.msra.mxu0 %v969_v30 }
  0x2c   : > { %881 = vmatprep.subr.bf16.mxu0 %v972_v33 }
  0x2d   : > { %902 = vmatpush3.bf16.msra.mxu1 %v971_v32 }
  0x2e   : > { %903 = vmatprep.subr.bf16.mxu1 %v974_v37 }
  0x2f   : > { %882 = vmatpush3.bf16.msra.mxu0 %v973_v35 }
  0x30   : > { %911 = vmatprep.subr.bf16.mxu0 %v979_v40 }
  0x31   : > { %904 = vmatpush3.bf16.msra.mxu1 %v978_v39 }
  0x32   : > { %637 = vmatmul.mubr.bf16.vlgmr.msra.gmra.mrb[0].mxu0 %v975_v34 }
  0x33   : > { %912 = vmatpush3.bf16.msra.mxu0 %v983_v41  ;;  %718 = vmatprep.mubr.bf16.mxu0 %v1000_v36 }
  0x34   : > { %678 = vmatmul.mubr.bf16.vlgmr.msra.gmra.mrb[0].mxu1 %v980_v38  ;;  %913 = vmatprep.subr.bf16.mxu0 %v984_v42 }
  0x37   : > { %914 = vmatpush3.bf16.msra.mxu0 %v985_v43 }
  0x38   : > { %915 = vmatprep.subr.bf16.mxu0 %v986_v44 }
  0x3b   : > { %916 = vmatpush3.bf16.msra.mxu0 %v987_v45 }
  0x3c   : > { %917 = vmatprep.subr.bf16.mxu0 %v988_v46 }
  0x3f   : > { %918 = vmatpush3.bf16.msra.mxu0 %v989_v47 }
  0x40   : > { %919 = vmatprep.subr.bf16.mxu0 %v990_v48 }
  0x43   : > { %920 = vmatpush3.bf16.msra.mxu0 %v991_v49 }
  0x44   : > { %921 = vmatprep.subr.bf16.mxu0 %v992_v50 }
  0x47   : > { %922 = vmatpush3.bf16.msra.mxu0 %v993_v51 }
  0x48   : > { %923 = vmatprep.subr.bf16.mxu0 %v994_v52 }
  0x4b   : > { %924 = vmatpush3.bf16.msra.mxu0 %v995_v53 }
  0x4c   : > { %925 = vmatprep.subr.bf16.mxu0 %v996_v54 }
  0x4f   : > { %926 = vmatpush3.bf16.msra.mxu0 %v997_v55 }
  0x52   : > { %719 = vmatmul.mubr.bf16.vlgmr.msra.gmra.mrb[4].mxu0 %v998_v56 }
  0x86   : > { %v284_v57 = vpop.permute.xlu0 %283 }
  0x8a   : > { %v279_v60 = vpop.permute.xlu0 %278 }
 0x105   : > { %v883_v58 = vpop.f32.mrb[0].mxu0 }
 0x106   : > { %v884_v59 = vpop.f32.mrb[1].mxu0 }
 0x107   : > { %v885_v61 = vadd.f32 %v884_v59, %v883_v58  ;;  %v886_v62 = vpop.f32.mrb[2].mxu0  ;;  %v905_v63 = vpop.f32.mrb[0].mxu1 }
 0x108   : > { %v887_v0 = vpop.f32.mrb[3].mxu0  ;;  %v906_v1 = vpop.f32.mrb[1].mxu1 }
 0x109   : > { %v639_v2 = vadd.f32 %v885_v61, %v279_v60  ;;  %v888_v3 = vadd.f32 %v887_v0, %v886_v62  ;;  %v907_v4 = vadd.f32 %v906_v1, %v905_v63  ;;  %v908_v5 = vpop.f32.mrb[2].mxu1 }
 0x10a   : > { %v909_v6 = vpop.f32.mrb[3].mxu1 }
 0x10b   : > { %v642_v7 = vadd.f32 %v888_v3, %v284_v57  ;;  %v680_v8 = vadd.f32 %v907_v4, %v639_v2  ;;  %v910_v9 = vadd.f32 %v909_v6, %v908_v5 }
 0x10d   : > { %v683_v10 = vadd.f32 %v910_v9, %v642_v7 }
 0x125   : > { %v927_v11 = vpop.f32.mrb[4].mxu0 }
 0x126   : > { %v928_v12 = vpop.f32.mrb[5].mxu0 }
 0x127   : > { %v929_v13 = vadd.f32 %v928_v12, %v927_v11  ;;  %v930_v14 = vpop.f32.mrb[6].mxu0 }
 0x128   : > { %v931_v15 = vpop.f32.mrb[7].mxu0 }
 0x129   : > { %v721_v16 = vadd.f32 %v929_v13, %v680_v8  ;;  %v932_v17 = vadd.f32 %v931_v15, %v930_v14 }
 0x12b   : > { %v865_v18 = vpack.c.bf16 %v721_v16, %v721_v16  ;;  %v724_v19 = vadd.f32 %v932_v17, %v683_v10 }
 0x12d   : > { %736 = vst.msk [vmem:[%s170_s10] sm:$0xf] %vm735_vm0, %v865_v18  ;;  %v866_v21 = vpack.c.bf16 %v724_v19, %v724_v19 }
 0x12f   : > { %v741_v22 = vsel %vm739_vm2, %v866_v21, %v740_v20 }
 0x130   : > { %742 = vst [vmem:[%s170_s10 + $0x4] sm:$0xf] %v741_v22 }
 0x131 PF: > { %s13_s12 = sadd.s32 1, %s1007_s12  }
 0x132   : > { %p10_p4 = scmp.ge.s32.totalorder %s13_s12, 4  }
 0x134   :  { %12 = sbr.rel (!%p10_p4) target bundleno = 1 (0x1), region = 62 }

// kernel: network_forward.4
= control target key start
LH: loop header
LB: loop body
LE: loop exit
PB: predicated region body
PF: predicated region fallthrough
CT: control target
= control target key end

     0   :  { %s1133_s9 = smov 0   ;;  %s1286_s0 = inlined_call_operand.vmem [shape: bf16[2,15,4,4], index: 0, kind: input, shape index: {}]   ;;  %s1287_s1 = inlined_call_operand.vmem [shape: bf16[4,64], index: 1, kind: input, shape index: {}]   ;;  %s1288_s2 = inlined_call_operand.vmem [shape: bf16[2,15,4,64], index: 2, kind: output, shape index: {}]  }
   0x1 LB: > { %s925_s10 = sadd.s32 4294967295, %s1114_s9   ;;  %p929_p0 = scmp.ge.s32.totalorder %s1114_s9, 1  ;;  %s1114_s9 = sphi %s1133_s9, %s12_s9  }
   0x2   : > { %p112_p1 = scmp.lt.s32.totalorder %s1114_s9, 3 }
   0x4   : > { %p113_p2 = pnand %p929_p0, %p112_p1 }
   0x5   : > { %v145_v0 = vld [vmem:[%s1287_s1] sm:$0x3] (!%p113_p2)  ;;  %vm151_vm0 = vcmask (!%p113_p2), 1041408   ;;  %p134_p3 = scmp.lt.s32.totalorder (!%p113_p2), %s925_s10, 1  ;;  %v1116_v1 = vmov (!%p113_p2), 0.0   ;;  %vm1117_vm1 = vmmov (!%p113_p2), 0  }
   0x6   : > { %116 = sbr.rel (%p113_p2) target bundleno = 289 (0x121), region = 28  ;;  %1007 = vmatprep.subr.bf16.mxu0 (!%p113_p2), %v1116_v1  ;;  %v1145_v2 = vsel (!%p113_p2), %vm151_vm0, %v145_v0, 0  ;;  %1009 = vmatprep.mubr.msk.bf16.mxu0 (!%p113_p2), %vm1117_vm1, %v1116_v1  ;;  %vm147_vm2 = vcmask (!%p113_p2), 31744   ;;  %vm196_vm3 = vcmask (!%p113_p2), 517120  }
   0x7   : > { %1008 = vmatpush3.bf16.msra.mxu0 (!%p113_p2), %v1145_v2  ;;  %1013 = vmatprep.subr.bf16.mxu1 (!%p113_p2), %v1116_v1 }
   0x8   : > { %1019 = vmatprep.subr.bf16.mxu0 (!%p113_p2), %v1116_v1  ;;  %1014 = vmatpush3.bf16.msra.mxu1 (!%p113_p2), %v1145_v2 }
   0x9   : > { %1015 = vmatprep.mubr.msk.bf16.mxu1 (!%p113_p2), %vm1117_vm1, %v1116_v1  ;;  %1025 = vmatprep.subr.bf16.mxu1 (!%p113_p2), %v1116_v1 }
   0xd   : > { %s1290_s10 = smov (!%p134_p3, %s925_s10), 1 }
   0xe   : > { %s1097_s13 = smul.u32 30, %s1290_s10 }
  0x10   : > { %s1164_s16 = scalar_lea.vmem %s1286_s0, %s1097_s13  ;;  %s1251_s19 = scalar_lea.vmem %s1288_s2, %s1097_s13 }
  0x11   : > { %v146_v3 = vld [vmem:[%s1164_s16] sm:$0x3]  ;;  %v933_v4 = vld [vmem:[%s1164_s16 + $0x2] sm:$0x3]  ;;  %v936_v5 = vld [vmem:[%s1164_s16 + $0x4] sm:$0x3] }
  0x12   : > { %1010 = vmatmul.mubr.msk.bf16.vlgmr.msra.gmra.mrb[0].mxu0 %vm147_vm2, %v146_v3  ;;  %1016 = vmatmul.mubr.msk.bf16.vlgmr.msra.gmra.mrb[0].mxu1 %vm147_vm2, %v933_v4  ;;  %v939_v6 = vld [vmem:[%s1164_s16 + $0x6] sm:$0x3]  ;;  %v942_v7 = vld [vmem:[%s1164_s16 + $0x8] sm:$0x3]  ;;  %v945_v8 = vld [vmem:[%s1164_s16 + $0xa] sm:$0x3] }
  0x13   : > { %1020 = vmatpush3.bf16.msra.mxu0 %v1145_v2  ;;  %1021 = vmatprep.mubr.msk.bf16.mxu0 %vm1117_vm1, %v1116_v1  ;;  %v948_v9 = vld [vmem:[%s1164_s16 + $0xc] sm:$0x3]  ;;  %v951_v10 = vld [vmem:[%s1164_s16 + $0xe] sm:$0x3]  ;;  %v954_v11 = vld [vmem:[%s1164_s16 + $0x10] sm:$0x3] }
  0x14   : > { %1031 = vmatprep.subr.bf16.mxu0 %v1116_v1  ;;  %1026 = vmatpush3.bf16.msra.mxu1 %v1145_v2  ;;  %v957_v12 = vld [vmem:[%s1164_s16 + $0x12] sm:$0x3]  ;;  %v960_v13 = vld [vmem:[%s1164_s16 + $0x14] sm:$0x3]  ;;  %v963_v14 = vld [vmem:[%s1164_s16 + $0x16] sm:$0x3] }
  0x15   : > { %1027 = vmatprep.mubr.msk.bf16.mxu1 %vm1117_vm1, %v1116_v1  ;;  %1037 = vmatprep.subr.bf16.mxu1 %v1116_v1  ;;  %v966_v15 = vld [vmem:[%s1164_s16 + $0x18] sm:$0x3]  ;;  %v969_v16 = vld [vmem:[%s1164_s16 + $0x1a] sm:$0x3]  ;;  %v972_v17 = vld [vmem:[%s1164_s16 + $0x1c] sm:$0x3] }
  0x1a   : > { %1022 = vmatmul.mubr.msk.bf16.vlgmr.msra.gmra.mrb[4].mxu0 %vm147_vm2, %v936_v5  ;;  %1028 = vmatmul.mubr.msk.bf16.vlgmr.msra.gmra.mrb[4].mxu1 %vm147_vm2, %v939_v6 }
  0x1b   : > { %1032 = vmatpush3.bf16.msra.mxu0 %v1145_v2  ;;  %1033 = vmatprep.mubr.msk.bf16.mxu0 %vm1117_vm1, %v1116_v1 }
  0x1c   : > { %1043 = vmatprep.subr.bf16.mxu0 %v1116_v1  ;;  %1038 = vmatpush3.bf16.msra.mxu1 %v1145_v2 }
  0x1d   : > { %1039 = vmatprep.mubr.msk.bf16.mxu1 %vm1117_vm1, %v1116_v1  ;;  %1049 = vmatprep.subr.bf16.mxu1 %v1116_v1 }
  0x22   : > { %1034 = vmatmul.mubr.msk.bf16.vlgmr.msra.gmra.mrb[8].mxu0 %vm147_vm2, %v942_v7  ;;  %1040 = vmatmul.mubr.msk.bf16.vlgmr.msra.gmra.mrb[8].mxu1 %vm147_vm2, %v945_v8 }
  0x23   : > { %1044 = vmatpush3.bf16.msra.mxu0 %v1145_v2  ;;  %1045 = vmatprep.mubr.msk.bf16.mxu0 %vm1117_vm1, %v1116_v1 }
  0x24   : > { %1055 = vmatprep.subr.bf16.mxu0 %v1116_v1  ;;  %1050 = vmatpush3.bf16.msra.mxu1 %v1145_v2 }
  0x25   : > { %1051 = vmatprep.mubr.msk.bf16.mxu1 %vm1117_vm1, %v1116_v1  ;;  %1061 = vmatprep.subr.bf16.mxu1 %v1116_v1 }
  0x2a   : > { %1046 = vmatmul.mubr.msk.bf16.vlgmr.msra.gmra.mrb[12].mxu0 %vm147_vm2, %v948_v9  ;;  %1052 = vmatmul.mubr.msk.bf16.vlgmr.msra.gmra.mrb[12].mxu1 %vm147_vm2, %v951_v10 }
  0x2b   : > { %1056 = vmatpush3.bf16.msra.mxu0 %v1145_v2  ;;  %1057 = vmatprep.mubr.msk.bf16.mxu0 %vm1117_vm1, %v1116_v1 }
  0x2c   : > { %1067 = vmatprep.subr.bf16.mxu0 %v1116_v1  ;;  %1062 = vmatpush3.bf16.msra.mxu1 %v1145_v2 }
  0x2d   : > { %1063 = vmatprep.mubr.msk.bf16.mxu1 %vm1117_vm1, %v1116_v1  ;;  %1073 = vmatprep.subr.bf16.mxu1 %v1116_v1 }
  0x32   : > { %1058 = vmatmul.mubr.msk.bf16.vlgmr.msra.gmra.mrb[16].mxu0 %vm147_vm2, %v954_v11  ;;  %1064 = vmatmul.mubr.msk.bf16.vlgmr.msra.gmra.mrb[16].mxu1 %vm147_vm2, %v957_v12 }
  0x33   : > { %1068 = vmatpush3.bf16.msra.mxu0 %v1145_v2  ;;  %1069 = vmatprep.mubr.msk.bf16.mxu0 %vm1117_vm1, %v1116_v1 }
  0x34   : > { %1079 = vmatprep.subr.bf16.mxu0 %v1116_v1  ;;  %1074 = vmatpush3.bf16.msra.mxu1 %v1145_v2 }
  0x35   : > { %1075 = vmatprep.mubr.msk.bf16.mxu1 %vm1117_vm1, %v1116_v1  ;;  %1085 = vmatprep.subr.bf16.mxu1 %v1116_v1 }
  0x3a   : > { %1070 = vmatmul.mubr.msk.bf16.vlgmr.msra.gmra.mrb[20].mxu0 %vm147_vm2, %v960_v13  ;;  %1076 = vmatmul.mubr.msk.bf16.vlgmr.msra.gmra.mrb[20].mxu1 %vm147_vm2, %v963_v14 }
  0x3b   : > { %1080 = vmatpush3.bf16.msra.mxu0 %v1145_v2  ;;  %1081 = vmatprep.mubr.msk.bf16.mxu0 %vm1117_vm1, %v1116_v1 }
  0x3c   : > { %1091 = vmatprep.subr.bf16.mxu0 %v1116_v1  ;;  %1086 = vmatpush3.bf16.msra.mxu1 %v1145_v2 }
  0x3d   : > { %1087 = vmatprep.mubr.msk.bf16.mxu1 %vm1117_vm1, %v1116_v1 }
  0x42   : > { %1082 = vmatmul.mubr.msk.bf16.vlgmr.msra.gmra.mrb[24].mxu0 %vm147_vm2, %v966_v15  ;;  %1088 = vmatmul.mubr.msk.bf16.vlgmr.msra.gmra.mrb[24].mxu1 %vm147_vm2, %v969_v16 }
  0x43   : > { %1092 = vmatpush3.bf16.msra.mxu0 %v1145_v2  ;;  %1093 = vmatprep.mubr.msk.bf16.mxu0 %vm1117_vm1, %v1116_v1 }
  0x4a   : > { %1094 = vmatmul.mubr.msk.bf16.vlgmr.msra.gmra.mrb[28].mxu0 %vm147_vm2, %v972_v17 }
  0xe5   : > { %v189_v18 = vpop.f32.mrb[0].mxu0  ;;  %v237_v19 = vpop.f32.mrb[0].mxu1 }
  0xe6   : > { %v195_v20 = vpack.c.bf16 %v189_v18, %v189_v18  ;;  %v1011_v21 = vpop.f32.mrb[1].mxu0  ;;  %v243_v22 = vpack.c.bf16 %v237_v19, %v237_v19  ;;  %v1017_v23 = vpop.f32.mrb[1].mxu1 }
  0xe7   : > { %v192_v24 = vpop.f32.mrb[2].mxu0  ;;  %v240_v25 = vpop.f32.mrb[2].mxu1 }
  0xe8   : > { %197 = vst.msk [vmem:[%s1251_s19] sm:$0x3] %vm196_vm3, %v195_v20  ;;  %v1012_v26 = vpop.f32.mrb[3].mxu0  ;;  %935 = vst.msk [vmem:[%s1251_s19 + $0x2] sm:$0x3] %vm196_vm3, %v243_v22  ;;  %v1018_v27 = vpop.f32.mrb[3].mxu1 }
  0xed   : > { %v285_v28 = vpop.f32.mrb[4].mxu0  ;;  %v333_v29 = vpop.f32.mrb[4].mxu1 }
  0xee   : > { %v291_v30 = vpack.c.bf16 %v285_v28, %v285_v28  ;;  %v1023_v31 = vpop.f32.mrb[5].mxu0  ;;  %v339_v32 = vpack.c.bf16 %v333_v29, %v333_v29  ;;  %v1029_v33 = vpop.f32.mrb[5].mxu1 }
  0xef   : > { %v288_v34 = vpop.f32.mrb[6].mxu0  ;;  %v336_v35 = vpop.f32.mrb[6].mxu1 }
  0xf0   : > { %938 = vst.msk [vmem:[%s1251_s19 + $0x4] sm:$0x3] %vm196_vm3, %v291_v30  ;;  %v1024_v36 = vpop.f32.mrb[7].mxu0  ;;  %941 = vst.msk [vmem:[%s1251_s19 + $0x6] sm:$0x3] %vm196_vm3, %v339_v32  ;;  %v1030_v37 = vpop.f32.mrb[7].mxu1 }
  0xf5   : > { %v381_v38 = vpop.f32.mrb[8].mxu0  ;;  %v429_v39 = vpop.f32.mrb[8].mxu1 }
  0xf6   : > { %v387_v40 = vpack.c.bf16 %v381_v38, %v381_v38  ;;  %v1035_v41 = vpop.f32.mrb[9].mxu0  ;;  %v435_v42 = vpack.c.bf16 %v429_v39, %v429_v39  ;;  %v1041_v43 = vpop.f32.mrb[9].mxu1 }
  0xf7   : > { %v384_v44 = vpop.f32.mrb[10].mxu0  ;;  %v432_v45 = vpop.f32.mrb[10].mxu1 }
  0xf8   : > { %944 = vst.msk [vmem:[%s1251_s19 + $0x8] sm:$0x3] %vm196_vm3, %v387_v40  ;;  %v1036_v46 = vpop.f32.mrb[11].mxu0  ;;  %947 = vst.msk [vmem:[%s1251_s19 + $0xa] sm:$0x3] %vm196_vm3, %v435_v42  ;;  %v1042_v47 = vpop.f32.mrb[11].mxu1 }
  0xfd   : > { %v477_v48 = vpop.f32.mrb[12].mxu0  ;;  %v525_v49 = vpop.f32.mrb[12].mxu1 }
  0xfe   : > { %v483_v50 = vpack.c.bf16 %v477_v48, %v477_v48  ;;  %v1047_v51 = vpop.f32.mrb[13].mxu0  ;;  %v531_v52 = vpack.c.bf16 %v525_v49, %v525_v49  ;;  %v1053_v53 = vpop.f32.mrb[13].mxu1 }
  0xff   : > { %v480_v54 = vpop.f32.mrb[14].mxu0  ;;  %v528_v55 = vpop.f32.mrb[14].mxu1 }
 0x100   : > { %950 = vst.msk [vmem:[%s1251_s19 + $0xc] sm:$0x3] %vm196_vm3, %v483_v50  ;;  %v1048_v56 = vpop.f32.mrb[15].mxu0  ;;  %953 = vst.msk [vmem:[%s1251_s19 + $0xe] sm:$0x3] %vm196_vm3, %v531_v52  ;;  %v1054_v57 = vpop.f32.mrb[15].mxu1 }
 0x105   : > { %v573_v58 = vpop.f32.mrb[16].mxu0  ;;  %v621_v59 = vpop.f32.mrb[16].mxu1 }
 0x106   : > { %v579_v60 = vpack.c.bf16 %v573_v58, %v573_v58  ;;  %v1059_v61 = vpop.f32.mrb[17].mxu0  ;;  %v627_v62 = vpack.c.bf16 %v621_v59, %v621_v59  ;;  %v1065_v63 = vpop.f32.mrb[17].mxu1 }
 0x107   : > { %v576_v0 = vpop.f32.mrb[18].mxu0  ;;  %v624_v1 = vpop.f32.mrb[18].mxu1 }
 0x108   : > { %956 = vst.msk [vmem:[%s1251_s19 + $0x10] sm:$0x3] %vm196_vm3, %v579_v60  ;;  %v1060_v2 = vpop.f32.mrb[19].mxu0  ;;  %959 = vst.msk [vmem:[%s1251_s19 + $0x12] sm:$0x3] %vm196_vm3, %v627_v62  ;;  %v1066_v3 = vpop.f32.mrb[19].mxu1 }
 0x10d   : > { %v669_v4 = vpop.f32.mrb[20].mxu0  ;;  %v717_v5 = vpop.f32.mrb[20].mxu1 }
 0x10e   : > { %v675_v6 = vpack.c.bf16 %v669_v4, %v669_v4  ;;  %v1071_v7 = vpop.f32.mrb[21].mxu0  ;;  %v723_v8 = vpack.c.bf16 %v717_v5, %v717_v5  ;;  %v1077_v9 = vpop.f32.mrb[21].mxu1 }
 0x10f   : > { %v672_v10 = vpop.f32.mrb[22].mxu0  ;;  %v720_v11 = vpop.f32.mrb[22].mxu1 }
 0x110   : > { %962 = vst.msk [vmem:[%s1251_s19 + $0x14] sm:$0x3] %vm196_vm3, %v675_v6  ;;  %v1072_v12 = vpop.f32.mrb[23].mxu0  ;;  %965 = vst.msk [vmem:[%s1251_s19 + $0x16] sm:$0x3] %vm196_vm3, %v723_v8  ;;  %v1078_v13 = vpop.f32.mrb[23].mxu1 }
 0x115   : > { %v765_v14 = vpop.f32.mrb[24].mxu0  ;;  %v813_v15 = vpop.f32.mrb[24].mxu1 }
 0x116   : > { %v771_v16 = vpack.c.bf16 %v765_v14, %v765_v14  ;;  %v1083_v17 = vpop.f32.mrb[25].mxu0  ;;  %v819_v18 = vpack.c.bf16 %v813_v15, %v813_v15  ;;  %v1089_v19 = vpop.f32.mrb[25].mxu1 }
 0x117   : > { %v768_v20 = vpop.f32.mrb[26].mxu0  ;;  %v816_v21 = vpop.f32.mrb[26].mxu1 }
 0x118   : > { %968 = vst.msk [vmem:[%s1251_s19 + $0x18] sm:$0x3] %vm196_vm3, %v771_v16  ;;  %v1084_v22 = vpop.f32.mrb[27].mxu0  ;;  %971 = vst.msk [vmem:[%s1251_s19 + $0x1a] sm:$0x3] %vm196_vm3, %v819_v18  ;;  %v1090_v23 = vpop.f32.mrb[27].mxu1 }
 0x11d   : > { %v861_v24 = vpop.f32.mrb[28].mxu0 }
 0x11e   : > { %v867_v25 = vpack.c.bf16 %v861_v24, %v861_v24  ;;  %v1095_v26 = vpop.f32.mrb[29].mxu0 }
 0x11f   : > { %v864_v27 = vpop.f32.mrb[30].mxu0 }
 0x120   : > { %974 = vst.msk [vmem:[%s1251_s19 + $0x1c] sm:$0x3] %vm196_vm3, %v867_v25  ;;  %v1096_v28 = vpop.f32.mrb[31].mxu0 }
 0x121 PF: > { %s12_s9 = sadd.s32 1, %s1114_s9  }
 0x122   : > { %p9_p4 = scmp.ge.s32.totalorder %s12_s9, 4  }
 0x124   :  { %11 = sbr.rel (!%p9_p4) target bundleno = 1 (0x1), region = 86 }

// kernel: network_forward.5
= control target key start
LH: loop header
LB: loop body
LE: loop exit
PB: predicated region body
PF: predicated region fallthrough
CT: control target
= control target key end

     0   :  { %7 = vsyncpa [#allocation3], 0  ;;  %s2665_s0 = inlined_call_operand.vmem [shape: bf16[2,15,4,64], index: 0, kind: input, shape index: {}]   ;;  %s2666_s1 = inlined_call_operand.vmem [shape: bf16[64,4], index: 1, kind: input, shape index: {}]   ;;  %s2667_s2 = inlined_call_operand.hbm [shape: f32[2,15,64,64], index: 2, kind: output, shape index: {}]  }
   0x1   :  { %9 = vsyncpa [#allocation3 + $0x1], 0  ;;  %s2115_s9 = smov 0   ;;  %s2117_s10 = smov 0  }
   0x2   :  { %s2119_s11 = smov 0   ;;  %s2121_s12 = smov 0  }
   0x3   :  { %s2123_s13 = smov 0   ;;  %s2125_s14 = smov 0  }
   0x4 LB: > { %s1510_s15 = sadd.s32 4294967295, %s2095_s14   ;;  %s1511_s16 = sadd.s32 4294967294, %s2095_s14   ;;  %s2095_s14 = sphi %s2125_s14, %s15_s14   ;;  %s2091_s13 = sphi %s2123_s13, %s2674_s13   ;;  %s2087_s12 = sphi %s2121_s12, %s2673_s12   ;;  %s2083_s11 = sphi %s2119_s11, %s2672_s11   ;;  %s2079_s10 = sphi %s2117_s10, %s2671_s10   ;;  %s2075_s9 = sphi %s2115_s9, %s2670_s9  }
   0x5   : > { %s27_s17 = sadd.s32 1, %s2091_s13  ;;  %s88_s18 = sadd.s32 1, %s2083_s11 }
   0x6   : > { %p29_p0 = scmp.ge.s32.totalorder %s27_s17, 2  ;;  %p98_p1 = scmp.ne.s32.totalorder %s2083_s11, %s2079_s10 }
   0x7   : > { %p99_p2 = scmp.eq.s32.totalorder %s1510_s15, 1  ;;  %p104_p3 = scmp.ne.s32.totalorder %s2079_s10, %s2075_s9 }
   0x8   : > { %s2676_s17 = smov (%p29_p0, %s27_s17), 0  ;;  %p105_p5 = scmp.eq.s32.totalorder %s1511_s16, 1 }
   0x9   : > { %p2155_p4 = por %p99_p2, %p98_p1  ;;  %s83_s20 = ssub.s32 %s2091_s13, %s2676_s17 }
   0xa   : > { %p1515_p6 = scmp.ge.s32.totalorder %s2095_s14, 1  ;;  %p86_p7 = scmp.eq.s32.totalorder %s83_s20, 0 }
   0xb   : > { %p2162_p8 = por %p105_p5, %p104_p3  ;;  %p140_p9 = scmp.lt.s32.totalorder %s2095_s14, 3 }
   0xc   : > { %s2168_s22 = scalar_select %p86_p7, %s2083_s11, %s88_s18  }
   0xd   : > { %p141_p10 = pnand %p1515_p6, %p140_p9 }
   0xe   : > { %p167_p11 = scmp.lt.s32.totalorder (!%p141_p10), %s2087_s12, 1  ;;  %v2174_v0 = vld [vmem:[%s2666_s1] sm:$0xff] (!%p141_p10)   ;;  %vm209_vm0 = vcmask (!%p141_p10), 31744   ;;  %v2180_v1 = vld [vmem:[%s2666_s1 + $0x10] sm:$0xff] (!%p141_p10)   ;;  %vm222_vm1 = vcmask (!%p141_p10), 1041408   ;;  %v2200_v6 = vld [vmem:[%s2666_s1 + $0x8] sm:$0xff] (!%p141_p10)  }
   0xf   : > { %144 = sbr.rel (%p141_p10) target bundleno = 374 (0x176), region = 28  ;;  %1787 = vmatprep.mubr.msk.bf16.mxu0 (!%p141_p10), %vm209_vm0, %v2174_v0  ;;  %1791 = vmatprep.mubr.msk.bf16.mxu1 (!%p141_p10), %vm209_vm0, %v2180_v1  ;;  %v2205_v7 = vld [vmem:[%s2666_s1 + $0x18] sm:$0xff] (!%p141_p10)   ;;  %s164_s8 = sand.u32 (!%p141_p10), 1, %s2079_s10   ;;  %vm291_vm2 = vcmask (!%p141_p10), 523264  }
  0x10   : > { %s1953_s15 = smul.u32 (!%p141_p10), 960, %s164_s8  ;;  %s2097_s27 = smov (!%p141_p10), [#allocation2]  }
  0x11   : > { %s1955_s18 = smul.u32 (!%p141_p10), 15360, %s2087_s12 }
  0x12   : > { %s2366_s16 = scalar_lea.vmem (!%p141_p10), [#allocation2], %s1953_s15 }
  0x13   : > { %s1422_s20 = sshll.u32 (!%p141_p10), %s2366_s16, 4  ;;  %s2603_s20 = int_to_ptr.vmem [resolvable:$true] %s1422_s20 }
  0x14   : > { %s2017_s26 = scalar_lea.vmem (!%p141_p10), %s2603_s20, 15360 }
  0x15   : > { %p2018_p12 = scmp.ne.s32.totalorder (!%p141_p10), %s2603_s20, %s2017_s26 }
  0x16   : > { %s168_s25 = scalar_select %p167_p11, %s2087_s12, 1 }
  0x17   : > { %s2619_s12 = scalar_lea.sflag [#allocation3], %s164_s8  ;;  %p2019_p13 = pnand %p2018_p12, %p2155_p4 }
  0x18   : > { %s1954_s28 = smul.u32 30, %s168_s25  ;;  %s2601_s25 = scalar_lea.hbm %s2667_s2, %s1955_s18 }
  0x19   : > { %p2020_p0 = pneg %p2019_p13 }
  0x1a   : > { %s2189_s3 = scalar_lea.vmem %s2665_s0, %s1954_s28  ;;  %s2021_s28 = sshll.u32 %s2097_s27, 4  ;;  %s2022_s28 = int_to_ptr.vmem [resolvable:$false] %s2021_s28 }
  0x1b   : > { %v188_v2 = vld [vmem:[%s2189_s3] sm:$0x3]  ;;  %v1525_v3 = vld [vmem:[%s2189_s3 + $0x2] sm:$0x3]  ;;  %v1538_v4 = vld [vmem:[%s2189_s3 + $0x4] sm:$0x3]  ;;  %p2024_p1 = scmp.lt.s32.totalorder %s2603_s20, %s2022_s28 }
  0x1c   : > { %1937 = vmatprep.subr.msk.bf16.mxu0 %vm222_vm1, %v188_v2  ;;  %1938 = vmatprep.subr.msk.bf16.mxu1 %vm222_vm1, %v188_v2  ;;  %v224_v5 = vsel %vm222_vm1, %v188_v2, 0  ;;  %v303_v8 = vsel %vm222_vm1, %v1525_v3, 0  ;;  %v382_v9 = vsel %vm222_vm1, %v1538_v4, 0  ;;  %v1551_v10 = vld [vmem:[%s2189_s3 + $0x6] sm:$0x3]  ;;  %s2023_s29 = scalar_lea.vmem %s2022_s28, 30720 }
  0x1d   : > { %1786 = vmatpush3.bf16.msra.mxu0 %v224_v5  ;;  %1936 = vmatpush3.bf16.msra.mxu1 %v224_v5  ;;  %v1564_v11 = vld [vmem:[%s2189_s3 + $0x8] sm:$0x3]  ;;  %v461_v12 = vsel %vm222_vm1, %v1551_v10, 0  ;;  %v1577_v14 = vld [vmem:[%s2189_s3 + $0xa] sm:$0x3]  ;;  %p2025_p2 = scmp.lt.s32.totalorder %s2023_s29, %s2017_s26 }
  0x1e   : > { %1939 = vmatprep.subr.msk.bf16.mxu1 %vm222_vm1, %v1525_v3  ;;  %1940 = vmatprep.subr.msk.bf16.mxu0 %vm222_vm1, %v1538_v4  ;;  %v540_v13 = vsel %vm222_vm1, %v1564_v11, 0  ;;  %v1590_v15 = vld [vmem:[%s2189_s3 + $0xc] sm:$0x3]  ;;  %v619_v16 = vsel %vm222_vm1, %v1577_v14, 0  ;;  %v1603_v18 = vld [vmem:[%s2189_s3 + $0xe] sm:$0x3] }
  0x1f   : > { %v698_v17 = vsel %vm222_vm1, %v1590_v15, 0  ;;  %v1616_v19 = vld [vmem:[%s2189_s3 + $0x10] sm:$0x3]  ;;  %v777_v20 = vsel %vm222_vm1, %v1603_v18, 0  ;;  %v1629_v22 = vld [vmem:[%s2189_s3 + $0x12] sm:$0x3]  ;;  %p2026_p3 = por %p2025_p2, %p2024_p1 }
  0x20   : > { %1788 = vmatmul.mubr.msk.bf16.vlgmr.msra.gmra.mrb[0].mxu0 %vm209_vm0, %v2200_v6  ;;  %1792 = vmatmul.mubr.msk.bf16.vlgmr.msra.gmra.mrb[0].mxu1 %vm209_vm0, %v2205_v7  ;;  %v856_v21 = vsel %vm222_vm1, %v1616_v19, 0  ;;  %v1642_v23 = vld [vmem:[%s2189_s3 + $0x14] sm:$0x3]  ;;  %v935_v24 = vsel %vm222_vm1, %v1629_v22, 0  ;;  %v1655_v26 = vld [vmem:[%s2189_s3 + $0x16] sm:$0x3] }
  0x21   : > { %1796 = vmatpush3.bf16.msra.mxu1 %v303_v8  ;;  %1806 = vmatpush3.bf16.msra.mxu0 %v382_v9  ;;  %v1014_v25 = vsel %vm222_vm1, %v1642_v23, 0  ;;  %v1668_v27 = vld [vmem:[%s2189_s3 + $0x18] sm:$0x3]  ;;  %v1093_v28 = vsel %vm222_vm1, %v1655_v26, 0  ;;  %v1681_v30 = vld [vmem:[%s2189_s3 + $0x1a] sm:$0x3]  ;;  %p2027_p5 = pnand %p2026_p3, %p2020_p0 }
  0x22   : > { %1797 = vmatprep.mubr.msk.bf16.mxu1 %vm209_vm0, %v2174_v0  ;;  %1807 = vmatprep.mubr.msk.bf16.mxu0 %vm209_vm0, %v2174_v0  ;;  %v1172_v29 = vsel %vm222_vm1, %v1668_v27, 0  ;;  %v1694_v31 = vld [vmem:[%s2189_s3 + $0x1c] sm:$0x3]  ;;  %v1251_v32 = vsel %vm222_vm1, %v1681_v30, 0 }
  0x23   : > { %1941 = vmatprep.subr.msk.bf16.mxu1 %vm222_vm1, %v1551_v10  ;;  %1942 = vmatprep.subr.msk.bf16.mxu0 %vm222_vm1, %v1564_v11  ;;  %v1330_v33 = vsel %vm222_vm1, %v1694_v31, 0 }
  0x28   : > { %1798 = vmatmul.mubr.msk.bf16.vlgmr.msra.gmra.mrb[4].mxu1 %vm209_vm0, %v2200_v6  ;;  %1808 = vmatmul.mubr.msk.bf16.vlgmr.msra.gmra.mrb[4].mxu0 %vm209_vm0, %v2200_v6 }
  0x29   : > { %1816 = vmatpush3.bf16.msra.mxu1 %v461_v12  ;;  %1826 = vmatpush3.bf16.msra.mxu0 %v540_v13 }
  0x2a   : > { %1801 = vmatprep.mubr.msk.bf16.mxu1 %vm209_vm0, %v2180_v1  ;;  %1811 = vmatprep.mubr.msk.bf16.mxu0 %vm209_vm0, %v2180_v1 }
  0x2b   : > { %1943 = vmatprep.subr.msk.bf16.mxu1 %vm222_vm1, %v1577_v14  ;;  %1944 = vmatprep.subr.msk.bf16.mxu0 %vm222_vm1, %v1590_v15 }
  0x30   : > { %1802 = vmatmul.mubr.msk.bf16.gmra.mrb[8].mxu1 %vm209_vm0, %v2205_v7  ;;  %1812 = vmatmul.mubr.msk.bf16.gmra.mrb[8].mxu0 %vm209_vm0, %v2205_v7 }
  0x31   : > { %1817 = vmatprep.mubr.msk.bf16.mxu1 %vm209_vm0, %v2174_v0  ;;  %1827 = vmatprep.mubr.msk.bf16.mxu0 %vm209_vm0, %v2174_v0 }
  0x38   : > { %1818 = vmatmul.mubr.msk.bf16.vlgmr.msra.gmra.mrb[12].mxu1 %vm209_vm0, %v2200_v6  ;;  %1828 = vmatmul.mubr.msk.bf16.vlgmr.msra.gmra.mrb[12].mxu0 %vm209_vm0, %v2200_v6 }
  0x39   : > { %1836 = vmatpush3.bf16.msra.mxu1 %v619_v16  ;;  %1846 = vmatpush3.bf16.msra.mxu0 %v698_v17 }
  0x3a   : > { %1821 = vmatprep.mubr.msk.bf16.mxu1 %vm209_vm0, %v2180_v1  ;;  %1831 = vmatprep.mubr.msk.bf16.mxu0 %vm209_vm0, %v2180_v1 }
  0x3b   : > { %1945 = vmatprep.subr.msk.bf16.mxu1 %vm222_vm1, %v1603_v18  ;;  %1946 = vmatprep.subr.msk.bf16.mxu0 %vm222_vm1, %v1616_v19 }
  0x40   : > { %1822 = vmatmul.mubr.msk.bf16.gmra.mrb[16].mxu1 %vm209_vm0, %v2205_v7  ;;  %1832 = vmatmul.mubr.msk.bf16.gmra.mrb[16].mxu0 %vm209_vm0, %v2205_v7 }
  0x41   : > { %1837 = vmatprep.mubr.msk.bf16.mxu1 %vm209_vm0, %v2174_v0  ;;  %1847 = vmatprep.mubr.msk.bf16.mxu0 %vm209_vm0, %v2174_v0 }
  0x48   : > { %1838 = vmatmul.mubr.msk.bf16.vlgmr.msra.gmra.mrb[20].mxu1 %vm209_vm0, %v2200_v6  ;;  %1848 = vmatmul.mubr.msk.bf16.vlgmr.msra.gmra.mrb[20].mxu0 %vm209_vm0, %v2200_v6 }
  0x49   : > { %1856 = vmatpush3.bf16.msra.mxu1 %v777_v20  ;;  %1866 = vmatpush3.bf16.msra.mxu0 %v856_v21 }
  0x4a   : > { %1841 = vmatprep.mubr.msk.bf16.mxu1 %vm209_vm0, %v2180_v1  ;;  %1851 = vmatprep.mubr.msk.bf16.mxu0 %vm209_vm0, %v2180_v1 }
  0x4b   : > { %1947 = vmatprep.subr.msk.bf16.mxu1 %vm222_vm1, %v1629_v22  ;;  %1948 = vmatprep.subr.msk.bf16.mxu0 %vm222_vm1, %v1642_v23 }
  0x50   : > { %1842 = vmatmul.mubr.msk.bf16.gmra.mrb[24].mxu1 %vm209_vm0, %v2205_v7  ;;  %1852 = vmatmul.mubr.msk.bf16.gmra.mrb[24].mxu0 %vm209_vm0, %v2205_v7 }
  0x51   : > { %1857 = vmatprep.mubr.msk.bf16.mxu1 %vm209_vm0, %v2174_v0  ;;  %1867 = vmatprep.mubr.msk.bf16.mxu0 %vm209_vm0, %v2174_v0 }
  0x58   : > { %1858 = vmatmul.mubr.msk.bf16.vlgmr.msra.gmra.mrb[28].mxu1 %vm209_vm0, %v2200_v6  ;;  %1868 = vmatmul.mubr.msk.bf16.vlgmr.msra.gmra.mrb[28].mxu0 %vm209_vm0, %v2200_v6 }
  0x59   : > { %1876 = vmatpush3.bf16.msra.mxu1 %v935_v24  ;;  %1886 = vmatpush3.bf16.msra.mxu0 %v1014_v25 }
  0x5a   : > { %1861 = vmatprep.mubr.msk.bf16.mxu1 %vm209_vm0, %v2180_v1  ;;  %1871 = vmatprep.mubr.msk.bf16.mxu0 %vm209_vm0, %v2180_v1 }
  0x5b   : > { %1949 = vmatprep.subr.msk.bf16.mxu1 %vm222_vm1, %v1655_v26  ;;  %1950 = vmatprep.subr.msk.bf16.mxu0 %vm222_vm1, %v1668_v27 }
  0x60   : > { %1862 = vmatmul.mubr.msk.bf16.gmra.mrb[32].mxu1 %vm209_vm0, %v2205_v7  ;;  %1872 = vmatmul.mubr.msk.bf16.gmra.mrb[32].mxu0 %vm209_vm0, %v2205_v7 }
  0x61   : > { %1877 = vmatprep.mubr.msk.bf16.mxu1 %vm209_vm0, %v2174_v0  ;;  %1887 = vmatprep.mubr.msk.bf16.mxu0 %vm209_vm0, %v2174_v0 }
  0x68   : > { %1878 = vmatmul.mubr.msk.bf16.vlgmr.msra.gmra.mrb[36].mxu1 %vm209_vm0, %v2200_v6  ;;  %1888 = vmatmul.mubr.msk.bf16.vlgmr.msra.gmra.mrb[36].mxu0 %vm209_vm0, %v2200_v6 }
  0x69   : > { %1896 = vmatpush3.bf16.msra.mxu1 %v1093_v28  ;;  %1906 = vmatpush3.bf16.msra.mxu0 %v1172_v29 }
  0x6a   : > { %1881 = vmatprep.mubr.msk.bf16.mxu1 %vm209_vm0, %v2180_v1  ;;  %1891 = vmatprep.mubr.msk.bf16.mxu0 %vm209_vm0, %v2180_v1 }
  0x6b   : > { %1951 = vmatprep.subr.msk.bf16.mxu1 %vm222_vm1, %v1681_v30  ;;  %1952 = vmatprep.subr.msk.bf16.mxu0 %vm222_vm1, %v1694_v31 }
  0x70   : > { %1882 = vmatmul.mubr.msk.bf16.gmra.mrb[40].mxu1 %vm209_vm0, %v2205_v7  ;;  %1892 = vmatmul.mubr.msk.bf16.gmra.mrb[40].mxu0 %vm209_vm0, %v2205_v7 }
  0x71   : > { %1897 = vmatprep.mubr.msk.bf16.mxu1 %vm209_vm0, %v2174_v0  ;;  %1907 = vmatprep.mubr.msk.bf16.mxu0 %vm209_vm0, %v2174_v0 }
  0x78   : > { %1898 = vmatmul.mubr.msk.bf16.vlgmr.msra.gmra.mrb[44].mxu1 %vm209_vm0, %v2200_v6  ;;  %1908 = vmatmul.mubr.msk.bf16.vlgmr.msra.gmra.mrb[44].mxu0 %vm209_vm0, %v2200_v6 }
  0x79   : > { %1916 = vmatpush3.bf16.msra.mxu1 %v1251_v32  ;;  %1926 = vmatpush3.bf16.msra.mxu0 %v1330_v33 }
  0x7a   : > { %1901 = vmatprep.mubr.msk.bf16.mxu1 %vm209_vm0, %v2180_v1  ;;  %1911 = vmatprep.mubr.msk.bf16.mxu0 %vm209_vm0, %v2180_v1 }
  0x80   : > { %1902 = vmatmul.mubr.msk.bf16.gmra.mrb[48].mxu1 %vm209_vm0, %v2205_v7  ;;  %1912 = vmatmul.mubr.msk.bf16.gmra.mrb[48].mxu0 %vm209_vm0, %v2205_v7 }
  0x81   : > { %1917 = vmatprep.mubr.msk.bf16.mxu1 %vm209_vm0, %v2174_v0  ;;  %1927 = vmatprep.mubr.msk.bf16.mxu0 %vm209_vm0, %v2174_v0 }
  0x88   : > { %1918 = vmatmul.mubr.msk.bf16.vlgmr.msra.gmra.mrb[52].mxu1 %vm209_vm0, %v2200_v6  ;;  %1928 = vmatmul.mubr.msk.bf16.vlgmr.msra.gmra.mrb[52].mxu0 %vm209_vm0, %v2200_v6 }
  0x89   : > { %1921 = vmatprep.mubr.msk.bf16.mxu1 %vm209_vm0, %v2180_v1  ;;  %1931 = vmatprep.mubr.msk.bf16.mxu0 %vm209_vm0, %v2180_v1 }
  0x90   : > { %1922 = vmatmul.mubr.msk.bf16.gmra.mrb[56].mxu1 %vm209_vm0, %v2205_v7  ;;  %1932 = vmatmul.mubr.msk.bf16.gmra.mrb[56].mxu0 %vm209_vm0, %v2205_v7 }
  0xf3   : > { %v1789_v34 = vpop.f32.mrb[0].mxu0  ;;  %v1793_v35 = vpop.f32.mrb[0].mxu1 }
  0xf4   : > { %294 = vst.msk [vmem:[%s2366_s16 + $0x10] sm:$0xff] %vm291_vm2, %v1789_v34  ;;  %298 = vst.msk [vmem:[%s2366_s16 + $0x30] sm:$0xff] %vm291_vm2, %v1793_v35  ;;  %v260_v36 = vpop.f32.mrb[1].mxu0  ;;  %v276_v37 = vpop.f32.mrb[1].mxu1 }
  0xf5   : > { %292 = vst.msk [vmem:[%s2366_s16] sm:$0xff] %vm291_vm2, %v260_v36  ;;  %296 = vst.msk [vmem:[%s2366_s16 + $0x20] sm:$0xff] %vm291_vm2, %v276_v37  ;;  %v1790_v38 = vpop.f32.mrb[2].mxu0  ;;  %v1794_v39 = vpop.f32.mrb[2].mxu1 }
  0xf6   : > { %295 = vst.msk [vmem:[%s2366_s16 + $0x18] sm:$0xff] %vm291_vm2, %v1790_v38  ;;  %299 = vst.msk [vmem:[%s2366_s16 + $0x38] sm:$0xff] %vm291_vm2, %v1794_v39  ;;  %v263_v40 = vpop.f32.mrb[3].mxu0  ;;  %v279_v41 = vpop.f32.mrb[3].mxu1 }
  0xf7   : > { %293 = vst.msk [vmem:[%s2366_s16 + $0x8] sm:$0xff] %vm291_vm2, %v263_v40  ;;  %297 = vst.msk [vmem:[%s2366_s16 + $0x28] sm:$0xff] %vm291_vm2, %v279_v41 }
  0xfb   : > { %v1799_v42 = vpop.f32.mrb[4].mxu1  ;;  %v1809_v43 = vpop.f32.mrb[4].mxu0 }
  0xfc   : > { %1532 = vst.msk [vmem:[%s2366_s16 + $0x50] sm:$0xff] %vm291_vm2, %v1799_v42  ;;  %1545 = vst.msk [vmem:[%s2366_s16 + $0x90] sm:$0xff] %vm291_vm2, %v1809_v43  ;;  %v339_v44 = vpop.f32.mrb[5].mxu1  ;;  %v418_v45 = vpop.f32.mrb[5].mxu0 }
  0xfd   : > { %1530 = vst.msk [vmem:[%s2366_s16 + $0x40] sm:$0xff] %vm291_vm2, %v339_v44  ;;  %1543 = vst.msk [vmem:[%s2366_s16 + $0x80] sm:$0xff] %vm291_vm2, %v418_v45  ;;  %v1800_v46 = vpop.f32.mrb[6].mxu1  ;;  %v1810_v47 = vpop.f32.mrb[6].mxu0 }
  0xfe   : > { %1533 = vst.msk [vmem:[%s2366_s16 + $0x58] sm:$0xff] %vm291_vm2, %v1800_v46  ;;  %1546 = vst.msk [vmem:[%s2366_s16 + $0x98] sm:$0xff] %vm291_vm2, %v1810_v47  ;;  %v342_v48 = vpop.f32.mrb[7].mxu1  ;;  %v421_v49 = vpop.f32.mrb[7].mxu0 }
  0xff   : > { %1531 = vst.msk [vmem:[%s2366_s16 + $0x48] sm:$0xff] %vm291_vm2, %v342_v48  ;;  %1544 = vst.msk [vmem:[%s2366_s16 + $0x88] sm:$0xff] %vm291_vm2, %v421_v49 }
 0x103   : > { %v1803_v50 = vpop.f32.mrb[8].mxu1  ;;  %v1813_v51 = vpop.f32.mrb[8].mxu0 }
 0x104   : > { %1536 = vst.msk [vmem:[%s2366_s16 + $0x70] sm:$0xff] %vm291_vm2, %v1803_v50  ;;  %1549 = vst.msk [vmem:[%s2366_s16 + $0xb0] sm:$0xff] %vm291_vm2, %v1813_v51  ;;  %v355_v52 = vpop.f32.mrb[9].mxu1  ;;  %v434_v53 = vpop.f32.mrb[9].mxu0 }
 0x105   : > { %1534 = vst.msk [vmem:[%s2366_s16 + $0x60] sm:$0xff] %vm291_vm2, %v355_v52  ;;  %1547 = vst.msk [vmem:[%s2366_s16 + $0xa0] sm:$0xff] %vm291_vm2, %v434_v53  ;;  %v1804_v54 = vpop.f32.mrb[10].mxu1  ;;  %v1814_v55 = vpop.f32.mrb[10].mxu0 }
 0x106   : > { %1537 = vst.msk [vmem:[%s2366_s16 + $0x78] sm:$0xff] %vm291_vm2, %v1804_v54  ;;  %1550 = vst.msk [vmem:[%s2366_s16 + $0xb8] sm:$0xff] %vm291_vm2, %v1814_v55  ;;  %v358_v56 = vpop.f32.mrb[11].mxu1  ;;  %v437_v57 = vpop.f32.mrb[11].mxu0 }
 0x107   : > { %1535 = vst.msk [vmem:[%s2366_s16 + $0x68] sm:$0xff] %vm291_vm2, %v358_v56  ;;  %1548 = vst.msk [vmem:[%s2366_s16 + $0xa8] sm:$0xff] %vm291_vm2, %v437_v57 }
 0x10b   : > { %v1819_v58 = vpop.f32.mrb[12].mxu1  ;;  %v1829_v59 = vpop.f32.mrb[12].mxu0 }
 0x10c   : > { %1558 = vst.msk [vmem:[%s2366_s16 + $0xd0] sm:$0xff] %vm291_vm2, %v1819_v58  ;;  %1571 = vst.msk [vmem:[%s2366_s16 + $0x110] sm:$0xff] %vm291_vm2, %v1829_v59  ;;  %v497_v60 = vpop.f32.mrb[13].mxu1  ;;  %v576_v61 = vpop.f32.mrb[13].mxu0 }
 0x10d   : > { %1556 = vst.msk [vmem:[%s2366_s16 + $0xc0] sm:$0xff] %vm291_vm2, %v497_v60  ;;  %1569 = vst.msk [vmem:[%s2366_s16 + $0x100] sm:$0xff] %vm291_vm2, %v576_v61  ;;  %v1820_v62 = vpop.f32.mrb[14].mxu1  ;;  %v1830_v63 = vpop.f32.mrb[14].mxu0 }
 0x10e   : > { %1559 = vst.msk [vmem:[%s2366_s16 + $0xd8] sm:$0xff] %vm291_vm2, %v1820_v62  ;;  %1572 = vst.msk [vmem:[%s2366_s16 + $0x118] sm:$0xff] %vm291_vm2, %v1830_v63  ;;  %v500_v0 = vpop.f32.mrb[15].mxu1  ;;  %v579_v1 = vpop.f32.mrb[15].mxu0 }
 0x10f   : > { %1557 = vst.msk [vmem:[%s2366_s16 + $0xc8] sm:$0xff] %vm291_vm2, %v500_v0  ;;  %1570 = vst.msk [vmem:[%s2366_s16 + $0x108] sm:$0xff] %vm291_vm2, %v579_v1 }
 0x113   : > { %v1823_v2 = vpop.f32.mrb[16].mxu1  ;;  %v1833_v3 = vpop.f32.mrb[16].mxu0 }
 0x114   : > { %1562 = vst.msk [vmem:[%s2366_s16 + $0xf0] sm:$0xff] %vm291_vm2, %v1823_v2  ;;  %1575 = vst.msk [vmem:[%s2366_s16 + $0x130] sm:$0xff] %vm291_vm2, %v1833_v3  ;;  %v513_v4 = vpop.f32.mrb[17].mxu1  ;;  %v592_v5 = vpop.f32.mrb[17].mxu0 }
 0x115   : > { %1560 = vst.msk [vmem:[%s2366_s16 + $0xe0] sm:$0xff] %vm291_vm2, %v513_v4  ;;  %1573 = vst.msk [vmem:[%s2366_s16 + $0x120] sm:$0xff] %vm291_vm2, %v592_v5  ;;  %v1824_v6 = vpop.f32.mrb[18].mxu1  ;;  %v1834_v7 = vpop.f32.mrb[18].mxu0 }
 0x116   : > { %1563 = vst.msk [vmem:[%s2366_s16 + $0xf8] sm:$0xff] %vm291_vm2, %v1824_v6  ;;  %1576 = vst.msk [vmem:[%s2366_s16 + $0x138] sm:$0xff] %vm291_vm2, %v1834_v7  ;;  %v516_v8 = vpop.f32.mrb[19].mxu1  ;;  %v595_v9 = vpop.f32.mrb[19].mxu0 }
 0x117   : > { %1561 = vst.msk [vmem:[%s2366_s16 + $0xe8] sm:$0xff] %vm291_vm2, %v516_v8  ;;  %1574 = vst.msk [vmem:[%s2366_s16 + $0x128] sm:$0xff] %vm291_vm2, %v595_v9 }
 0x11b   : > { %v1839_v10 = vpop.f32.mrb[20].mxu1  ;;  %v1849_v11 = vpop.f32.mrb[20].mxu0 }
 0x11c   : > { %1584 = vst.msk [vmem:[%s2366_s16 + $0x150] sm:$0xff] %vm291_vm2, %v1839_v10  ;;  %1597 = vst.msk [vmem:[%s2366_s16 + $0x190] sm:$0xff] %vm291_vm2, %v1849_v11  ;;  %v655_v12 = vpop.f32.mrb[21].mxu1  ;;  %v734_v13 = vpop.f32.mrb[21].mxu0 }
 0x11d   : > { %1582 = vst.msk [vmem:[%s2366_s16 + $0x140] sm:$0xff] %vm291_vm2, %v655_v12  ;;  %1595 = vst.msk [vmem:[%s2366_s16 + $0x180] sm:$0xff] %vm291_vm2, %v734_v13  ;;  %v1840_v14 = vpop.f32.mrb[22].mxu1  ;;  %v1850_v15 = vpop.f32.mrb[22].mxu0 }
 0x11e   : > { %1585 = vst.msk [vmem:[%s2366_s16 + $0x158] sm:$0xff] %vm291_vm2, %v1840_v14  ;;  %1598 = vst.msk [vmem:[%s2366_s16 + $0x198] sm:$0xff] %vm291_vm2, %v1850_v15  ;;  %v658_v16 = vpop.f32.mrb[23].mxu1  ;;  %v737_v17 = vpop.f32.mrb[23].mxu0 }
 0x11f   : > { %1583 = vst.msk [vmem:[%s2366_s16 + $0x148] sm:$0xff] %vm291_vm2, %v658_v16  ;;  %1596 = vst.msk [vmem:[%s2366_s16 + $0x188] sm:$0xff] %vm291_vm2, %v737_v17 }
 0x123   : > { %v1843_v18 = vpop.f32.mrb[24].mxu1  ;;  %v1853_v19 = vpop.f32.mrb[24].mxu0 }
 0x124   : > { %1588 = vst.msk [vmem:[%s2366_s16 + $0x170] sm:$0xff] %vm291_vm2, %v1843_v18  ;;  %1601 = vst.msk [vmem:[%s2366_s16 + $0x1b0] sm:$0xff] %vm291_vm2, %v1853_v19  ;;  %v671_v20 = vpop.f32.mrb[25].mxu1  ;;  %v750_v21 = vpop.f32.mrb[25].mxu0 }
 0x125   : > { %1586 = vst.msk [vmem:[%s2366_s16 + $0x160] sm:$0xff] %vm291_vm2, %v671_v20  ;;  %1599 = vst.msk [vmem:[%s2366_s16 + $0x1a0] sm:$0xff] %vm291_vm2, %v750_v21  ;;  %v1844_v22 = vpop.f32.mrb[26].mxu1  ;;  %v1854_v23 = vpop.f32.mrb[26].mxu0 }
 0x126   : > { %1589 = vst.msk [vmem:[%s2366_s16 + $0x178] sm:$0xff] %vm291_vm2, %v1844_v22  ;;  %1602 = vst.msk [vmem:[%s2366_s16 + $0x1b8] sm:$0xff] %vm291_vm2, %v1854_v23  ;;  %v674_v24 = vpop.f32.mrb[27].mxu1  ;;  %v753_v25 = vpop.f32.mrb[27].mxu0 }
 0x127   : > { %1587 = vst.msk [vmem:[%s2366_s16 + $0x168] sm:$0xff] %vm291_vm2, %v674_v24  ;;  %1600 = vst.msk [vmem:[%s2366_s16 + $0x1a8] sm:$0xff] %vm291_vm2, %v753_v25 }
 0x12b   : > { %v1859_v26 = vpop.f32.mrb[28].mxu1  ;;  %v1869_v27 = vpop.f32.mrb[28].mxu0 }
 0x12c   : > { %1610 = vst.msk [vmem:[%s2366_s16 + $0x1d0] sm:$0xff] %vm291_vm2, %v1859_v26  ;;  %1623 = vst.msk [vmem:[%s2366_s16 + $0x210] sm:$0xff] %vm291_vm2, %v1869_v27  ;;  %v813_v28 = vpop.f32.mrb[29].mxu1  ;;  %v892_v29 = vpop.f32.mrb[29].mxu0 }
 0x12d   : > { %1608 = vst.msk [vmem:[%s2366_s16 + $0x1c0] sm:$0xff] %vm291_vm2, %v813_v28  ;;  %1621 = vst.msk [vmem:[%s2366_s16 + $0x200] sm:$0xff] %vm291_vm2, %v892_v29  ;;  %v1860_v30 = vpop.f32.mrb[30].mxu1  ;;  %v1870_v31 = vpop.f32.mrb[30].mxu0 }
 0x12e   : > { %1611 = vst.msk [vmem:[%s2366_s16 + $0x1d8] sm:$0xff] %vm291_vm2, %v1860_v30  ;;  %1624 = vst.msk [vmem:[%s2366_s16 + $0x218] sm:$0xff] %vm291_vm2, %v1870_v31  ;;  %v816_v32 = vpop.f32.mrb[31].mxu1  ;;  %v895_v33 = vpop.f32.mrb[31].mxu0 }
 0x12f   : > { %1609 = vst.msk [vmem:[%s2366_s16 + $0x1c8] sm:$0xff] %vm291_vm2, %v816_v32  ;;  %1622 = vst.msk [vmem:[%s2366_s16 + $0x208] sm:$0xff] %vm291_vm2, %v895_v33 }
 0x133   : > { %v1863_v34 = vpop.f32.mrb[32].mxu1  ;;  %v1873_v35 = vpop.f32.mrb[32].mxu0 }
 0x134   : > { %1614 = vst.msk [vmem:[%s2366_s16 + $0x1f0] sm:$0xff] %vm291_vm2, %v1863_v34  ;;  %1627 = vst.msk [vmem:[%s2366_s16 + $0x230] sm:$0xff] %vm291_vm2, %v1873_v35  ;;  %v829_v36 = vpop.f32.mrb[33].mxu1  ;;  %v908_v37 = vpop.f32.mrb[33].mxu0 }
 0x135   : > { %1612 = vst.msk [vmem:[%s2366_s16 + $0x1e0] sm:$0xff] %vm291_vm2, %v829_v36  ;;  %1625 = vst.msk [vmem:[%s2366_s16 + $0x220] sm:$0xff] %vm291_vm2, %v908_v37  ;;  %v1864_v38 = vpop.f32.mrb[34].mxu1  ;;  %v1874_v39 = vpop.f32.mrb[34].mxu0 }
 0x136   : > { %1615 = vst.msk [vmem:[%s2366_s16 + $0x1f8] sm:$0xff] %vm291_vm2, %v1864_v38  ;;  %1628 = vst.msk [vmem:[%s2366_s16 + $0x238] sm:$0xff] %vm291_vm2, %v1874_v39  ;;  %v832_v40 = vpop.f32.mrb[35].mxu1  ;;  %v911_v41 = vpop.f32.mrb[35].mxu0 }
 0x137   : > { %1613 = vst.msk [vmem:[%s2366_s16 + $0x1e8] sm:$0xff] %vm291_vm2, %v832_v40  ;;  %1626 = vst.msk [vmem:[%s2366_s16 + $0x228] sm:$0xff] %vm291_vm2, %v911_v41 }
 0x13b   : > { %v1879_v42 = vpop.f32.mrb[36].mxu1  ;;  %v1889_v43 = vpop.f32.mrb[36].mxu0 }
 0x13c   : > { %1636 = vst.msk [vmem:[%s2366_s16 + $0x250] sm:$0xff] %vm291_vm2, %v1879_v42  ;;  %1649 = vst.msk [vmem:[%s2366_s16 + $0x290] sm:$0xff] %vm291_vm2, %v1889_v43  ;;  %v971_v44 = vpop.f32.mrb[37].mxu1  ;;  %v1050_v45 = vpop.f32.mrb[37].mxu0 }
 0x13d   : > { %1634 = vst.msk [vmem:[%s2366_s16 + $0x240] sm:$0xff] %vm291_vm2, %v971_v44  ;;  %1647 = vst.msk [vmem:[%s2366_s16 + $0x280] sm:$0xff] %vm291_vm2, %v1050_v45  ;;  %v1880_v46 = vpop.f32.mrb[38].mxu1  ;;  %v1890_v47 = vpop.f32.mrb[38].mxu0 }
 0x13e   : > { %1637 = vst.msk [vmem:[%s2366_s16 + $0x258] sm:$0xff] %vm291_vm2, %v1880_v46  ;;  %1650 = vst.msk [vmem:[%s2366_s16 + $0x298] sm:$0xff] %vm291_vm2, %v1890_v47  ;;  %v974_v48 = vpop.f32.mrb[39].mxu1  ;;  %v1053_v49 = vpop.f32.mrb[39].mxu0 }
 0x13f   : > { %1635 = vst.msk [vmem:[%s2366_s16 + $0x248] sm:$0xff] %vm291_vm2, %v974_v48  ;;  %1648 = vst.msk [vmem:[%s2366_s16 + $0x288] sm:$0xff] %vm291_vm2, %v1053_v49 }
 0x143   : > { %v1883_v50 = vpop.f32.mrb[40].mxu1  ;;  %v1893_v51 = vpop.f32.mrb[40].mxu0 }
 0x144   : > { %1640 = vst.msk [vmem:[%s2366_s16 + $0x270] sm:$0xff] %vm291_vm2, %v1883_v50  ;;  %1653 = vst.msk [vmem:[%s2366_s16 + $0x2b0] sm:$0xff] %vm291_vm2, %v1893_v51  ;;  %v987_v52 = vpop.f32.mrb[41].mxu1  ;;  %v1066_v53 = vpop.f32.mrb[41].mxu0 }
 0x145   : > { %1638 = vst.msk [vmem:[%s2366_s16 + $0x260] sm:$0xff] %vm291_vm2, %v987_v52  ;;  %1651 = vst.msk [vmem:[%s2366_s16 + $0x2a0] sm:$0xff] %vm291_vm2, %v1066_v53  ;;  %v1884_v54 = vpop.f32.mrb[42].mxu1  ;;  %v1894_v55 = vpop.f32.mrb[42].mxu0 }
 0x146   : > { %1641 = vst.msk [vmem:[%s2366_s16 + $0x278] sm:$0xff] %vm291_vm2, %v1884_v54  ;;  %1654 = vst.msk [vmem:[%s2366_s16 + $0x2b8] sm:$0xff] %vm291_vm2, %v1894_v55  ;;  %v990_v56 = vpop.f32.mrb[43].mxu1  ;;  %v1069_v57 = vpop.f32.mrb[43].mxu0 }
 0x147   : > { %1639 = vst.msk [vmem:[%s2366_s16 + $0x268] sm:$0xff] %vm291_vm2, %v990_v56  ;;  %1652 = vst.msk [vmem:[%s2366_s16 + $0x2a8] sm:$0xff] %vm291_vm2, %v1069_v57 }
 0x14b   : > { %v1899_v58 = vpop.f32.mrb[44].mxu1  ;;  %v1909_v59 = vpop.f32.mrb[44].mxu0 }
 0x14c   : > { %1662 = vst.msk [vmem:[%s2366_s16 + $0x2d0] sm:$0xff] %vm291_vm2, %v1899_v58  ;;  %1675 = vst.msk [vmem:[%s2366_s16 + $0x310] sm:$0xff] %vm291_vm2, %v1909_v59  ;;  %v1129_v60 = vpop.f32.mrb[45].mxu1  ;;  %v1208_v61 = vpop.f32.mrb[45].mxu0 }
 0x14d   : > { %1660 = vst.msk [vmem:[%s2366_s16 + $0x2c0] sm:$0xff] %vm291_vm2, %v1129_v60  ;;  %1673 = vst.msk [vmem:[%s2366_s16 + $0x300] sm:$0xff] %vm291_vm2, %v1208_v61  ;;  %v1900_v62 = vpop.f32.mrb[46].mxu1  ;;  %v1910_v63 = vpop.f32.mrb[46].mxu0 }
 0x14e   : > { %1663 = vst.msk [vmem:[%s2366_s16 + $0x2d8] sm:$0xff] %vm291_vm2, %v1900_v62  ;;  %1676 = vst.msk [vmem:[%s2366_s16 + $0x318] sm:$0xff] %vm291_vm2, %v1910_v63  ;;  %v1132_v0 = vpop.f32.mrb[47].mxu1  ;;  %v1211_v1 = vpop.f32.mrb[47].mxu0 }
 0x14f   : > { %1661 = vst.msk [vmem:[%s2366_s16 + $0x2c8] sm:$0xff] %vm291_vm2, %v1132_v0  ;;  %1674 = vst.msk [vmem:[%s2366_s16 + $0x308] sm:$0xff] %vm291_vm2, %v1211_v1 }
 0x153   : > { %v1903_v2 = vpop.f32.mrb[48].mxu1  ;;  %v1913_v3 = vpop.f32.mrb[48].mxu0 }
 0x154   : > { %1666 = vst.msk [vmem:[%s2366_s16 + $0x2f0] sm:$0xff] %vm291_vm2, %v1903_v2  ;;  %1679 = vst.msk [vmem:[%s2366_s16 + $0x330] sm:$0xff] %vm291_vm2, %v1913_v3  ;;  %v1145_v4 = vpop.f32.mrb[49].mxu1  ;;  %v1224_v5 = vpop.f32.mrb[49].mxu0 }
 0x155   : > { %1664 = vst.msk [vmem:[%s2366_s16 + $0x2e0] sm:$0xff] %vm291_vm2, %v1145_v4  ;;  %1677 = vst.msk [vmem:[%s2366_s16 + $0x320] sm:$0xff] %vm291_vm2, %v1224_v5  ;;  %v1904_v6 = vpop.f32.mrb[50].mxu1  ;;  %v1914_v7 = vpop.f32.mrb[50].mxu0 }
 0x156   : > { %1667 = vst.msk [vmem:[%s2366_s16 + $0x2f8] sm:$0xff] %vm291_vm2, %v1904_v6  ;;  %1680 = vst.msk [vmem:[%s2366_s16 + $0x338] sm:$0xff] %vm291_vm2, %v1914_v7  ;;  %v1148_v8 = vpop.f32.mrb[51].mxu1  ;;  %v1227_v9 = vpop.f32.mrb[51].mxu0 }
 0x157   : > { %1665 = vst.msk [vmem:[%s2366_s16 + $0x2e8] sm:$0xff] %vm291_vm2, %v1148_v8  ;;  %1678 = vst.msk [vmem:[%s2366_s16 + $0x328] sm:$0xff] %vm291_vm2, %v1227_v9 }
 0x15b   : > { %v1919_v10 = vpop.f32.mrb[52].mxu1  ;;  %v1929_v11 = vpop.f32.mrb[52].mxu0 }
 0x15c   : > { %1688 = vst.msk [vmem:[%s2366_s16 + $0x350] sm:$0xff] %vm291_vm2, %v1919_v10  ;;  %1701 = vst.msk [vmem:[%s2366_s16 + $0x390] sm:$0xff] %vm291_vm2, %v1929_v11  ;;  %v1287_v12 = vpop.f32.mrb[53].mxu1  ;;  %v1366_v13 = vpop.f32.mrb[53].mxu0 }
 0x15d   : > { %1686 = vst.msk [vmem:[%s2366_s16 + $0x340] sm:$0xff] %vm291_vm2, %v1287_v12  ;;  %1699 = vst.msk [vmem:[%s2366_s16 + $0x380] sm:$0xff] %vm291_vm2, %v1366_v13  ;;  %v1920_v14 = vpop.f32.mrb[54].mxu1  ;;  %v1930_v15 = vpop.f32.mrb[54].mxu0 }
 0x15e   : > { %1689 = vst.msk [vmem:[%s2366_s16 + $0x358] sm:$0xff] %vm291_vm2, %v1920_v14  ;;  %1702 = vst.msk [vmem:[%s2366_s16 + $0x398] sm:$0xff] %vm291_vm2, %v1930_v15  ;;  %v1290_v16 = vpop.f32.mrb[55].mxu1  ;;  %v1369_v17 = vpop.f32.mrb[55].mxu0 }
 0x15f   : > { %1687 = vst.msk [vmem:[%s2366_s16 + $0x348] sm:$0xff] %vm291_vm2, %v1290_v16  ;;  %1700 = vst.msk [vmem:[%s2366_s16 + $0x388] sm:$0xff] %vm291_vm2, %v1369_v17 }
 0x163   : > { %v1923_v18 = vpop.f32.mrb[56].mxu1  ;;  %v1933_v19 = vpop.f32.mrb[56].mxu0 }
 0x164   : > { %1692 = vst.msk [vmem:[%s2366_s16 + $0x370] sm:$0xff] %vm291_vm2, %v1923_v18  ;;  %1705 = vst.msk [vmem:[%s2366_s16 + $0x3b0] sm:$0xff] %vm291_vm2, %v1933_v19  ;;  %v1303_v20 = vpop.f32.mrb[57].mxu1  ;;  %v1382_v21 = vpop.f32.mrb[57].mxu0 }
 0x165   : > { %1690 = vst.msk [vmem:[%s2366_s16 + $0x360] sm:$0xff] %vm291_vm2, %v1303_v20  ;;  %1703 = vst.msk [vmem:[%s2366_s16 + $0x3a0] sm:$0xff] %vm291_vm2, %v1382_v21  ;;  %v1924_v22 = vpop.f32.mrb[58].mxu1  ;;  %v1934_v23 = vpop.f32.mrb[58].mxu0 }
 0x166   : > { %1693 = vst.msk [vmem:[%s2366_s16 + $0x378] sm:$0xff] %vm291_vm2, %v1924_v22  ;;  %1706 = vst.msk [vmem:[%s2366_s16 + $0x3b8] sm:$0xff] %vm291_vm2, %v1934_v23  ;;  %v1306_v24 = vpop.f32.mrb[59].mxu1  ;;  %v1385_v25 = vpop.f32.mrb[59].mxu0 }
 0x167   : > { %1691 = vst.msk [vmem:[%s2366_s16 + $0x368] sm:$0xff] %vm291_vm2, %v1306_v24  ;;  %1704 = vst.msk [vmem:[%s2366_s16 + $0x3a8] sm:$0xff] %vm291_vm2, %v1385_v25 }
 0x168   : > { %2030 = shalt.err (!%p2027_p5)
}
 0x169   : > { %s2031_s30 = scalar_lea.hbm %s2601_s25, 15360  ;;  %s2035_s5 = scalar_lea.hbm %s2667_s2, 30720 }
 0x16a   : > { %p2032_p6 = scmp.ne.s32.totalorder %s2601_s25, %s2031_s30  ;;  %p2036_p10 = scmp.lt.u32.totalorder %s2601_s25, %s2667_s2 }
 0x16b   : > { %p2037_p11 = scmp.lt.u32.totalorder %s2035_s5, %s2031_s30  ;;  %p2039_p13 = scmp.lt.u32.totalorder %s2031_s30, %s2601_s25 }
 0x16c   : > { %p2033_p7 = pnand %p2032_p6, %p2155_p4 }
 0x16d   : > { %p2038_p12 = por %p2037_p11, %p2036_p10 }
 0x16e   : > { %p2034_p9 = pneg %p2033_p7 }
 0x16f   : > { %p2040_p0 = por %p2039_p13, %p2038_p12 }
 0x171   : > { %p2041_p1 = pnand %p2040_p0, %p2034_p9 }
 0x173   : > { %2044 = shalt.err (!%p2041_p1)
}
 0x174   : > { %s2098_s8 = smov 128   ;;  %s2099_s15 = smov 8  }
 0x175   : > { %1956 = dma.vmem_to_hbm [thread:$0]  (%p2155_p4), %s2603_s20, 15360, %s2601_s25, %s2619_s12, %s2098_s8, %s2098_s8, %s2099_s15  }
 0x176 PF: > { %p1962_p2 = scmp.ge.s32.totalorder %s2095_s14, 2  ;;  %s1437_s16 = sand.u32 1, %s2075_s9  }
 0x177   : > { %s1438_s18 = scalar_lea.sflag [#allocation3], %s1437_s16 }
 0x178   : > { %p1959_p3 = pnand %p1962_p2, %p2162_p8 }
 0x17a   : > { %2070 = dma.done.wait (!%p1959_p3), %s1438_s18, 15360  }
 0x17b   : > { %2072 = vsyncadd (!%p1959_p3), %s1438_s18, 4294951936  ;;  %s15_s14 = sadd.s32 1, %s2095_s14   ;;  %s2670_s9 = smov %s2079_s10 }
 0x17c   : > { %p12_p5 = scmp.ge.s32.totalorder %s15_s14, 4   ;;  %s2671_s10 = smov %s2083_s11 }
 0x17d   : > { %s2672_s11 = smov %s2168_s22  ;;  %s2673_s12 = smov %s2091_s13 }
 0x17e   : > { %s2674_s13 = smov %s2676_s17  ;;  %14 = sbr.rel (!%p12_p5) target bundleno = 4 (0x4), region = 94 }
 0x185   :  { %1443 = vsyncpa [#allocation3], 1 }
 0x186   :  { %1445 = vsyncpa [#allocation3 + $0x1], 1 }

</bundles_post_ra>
